<compile_context>
chip_gen: v5e
topology: v5e:2x2
jax: 0.10.0
libtpu: 0.0.40
codegen_flags: <defaults>
</compile_context>

<pallas_src>
import functools

import jax
import jax.numpy as jnp
from jax import lax
from jax.experimental import pallas as pl
from jax.experimental.pallas import tpu as pltpu

EPS = 1e-15            # geoopt clamp_min on norms / denominators
ATANH_CLAMP = 1e-7     # geoopt clamps artanh input into (-1+eps, 1-eps)


def _artanh(x):
    x = jnp.clip(x, -1.0 + ATANH_CLAMP, 1.0 - ATANH_CLAMP)
    # 0.5*log((1+x)/(1-x)) written as a log difference -> no divide on the VPU path.
    return 0.5 * (jnp.log(1.0 + x) - jnp.log(1.0 - x))


def _expmap0(x):
    # (..., D) -> (..., D); Poincare ball (k = -1)
    n = jnp.maximum(jnp.sqrt(jnp.sum(x * x, axis=-1, keepdims=True)), EPS)
    return (jnp.tanh(n) / n) * x


def _dist_pre(x, y, x2, y2, xy):
    # hyperbolic distance with pre-computed row reductions; d(x,y)=2 artanh(||(-x)(+)y||)
    num = (1.0 - 2.0 * xy + y2) * (-x) + (1.0 - x2) * y
    den = jnp.maximum(1.0 - 2.0 * xy + x2 * y2, EPS)
    ma = num / den
    ma_norm = jnp.sqrt(jnp.sum(ma * ma, axis=-1, keepdims=True))
    return 2.0 * _artanh(ma_norm)


def _event_kernel(seq_ref, m1_ref, m2_ref, neg_ref, mneg_ref, w_ref,
                  out_ref, pre_ref, h_ref, *, num_neg):
    seq = seq_ref[...]            # (TB, S, Din)
    neg = neg_ref[...]            # (TB*num_neg, S, Din)  flat row = b*num_neg + n
    m1 = m1_ref[...]              # (TB, S, 1)
    m2 = m2_ref[...]              # (TB, S, 1)
    mneg = mneg_ref[...]          # (TB*num_neg, S, 1)
    w = w_ref[...]                # (Dout, Din)

    tb = seq_ref.shape[0]
    tbn = neg_ref.shape[0]
    d_out = w_ref.shape[0]

    # expmap0 (EUP tanh + lane-dim norms) on positives and negatives.
    proj = _expmap0(seq)
    nproj = _expmap0(neg)

    # Masked sums over S -> Euclidean tangent vectors, written into the stacked
    # scratch matrix [u_rows ; v_rows ; all negative rows].
    pre_ref[0:tb, :] = jnp.sum(proj * m1, axis=1)            # (TB, Din)
    pre_ref[tb:2 * tb, :] = jnp.sum(proj * m2, axis=1)       # (TB, Din)
    pre_ref[2 * tb:2 * tb + tbn, :] = jnp.sum(nproj * mneg, axis=1)   # (TBN, Din)

    # ---- single batched Mobius matvec: one MXU call for u, v and every negative ----
    pre = pre_ref[...]                                        # (M, Din)
    x2 = jnp.sum(pre * pre, axis=-1, keepdims=True)
    x_norm = jnp.maximum(jnp.sqrt(x2), EPS)
    mx = lax.dot_general(pre, w, (((1,), (1,)), ((), ())),
                         preferred_element_type=jnp.float32)  # (M, Dout)
    mx2 = jnp.sum(mx * mx, axis=-1, keepdims=True)
    mx_norm = jnp.maximum(jnp.sqrt(mx2), EPS)
    res = jnp.tanh(mx_norm / x_norm * _artanh(x_norm)) * (mx / mx_norm)
    h_ref[...] = jnp.where(mx2 == 0.0, 0.0, res)              # (M, Dout)

    u = h_ref[0:tb, :]                    # (TB, Dout)
    v = h_ref[tb:2 * tb, :]               # (TB, Dout)
    un = h_ref[2 * tb:2 * tb + tbn, :]    # (TBN, Dout), row b*num_neg + n

    # ---- shared row reductions (reused by cos_angle AND dist) ----
    nu2 = jnp.sum(u * u, axis=-1, keepdims=True)
    nv2 = jnp.sum(v * v, axis=-1, keepdims=True)
    nun2 = jnp.sum(un * un, axis=-1, keepdims=True)
    dot_uv = jnp.sum(u * v, axis=-1, keepdims=True)

    # cosine-angle term; ||u-v||^2 = nu2 + nv2 - 2<u,v> (reuses reductions).
    euclid = jnp.sqrt(jnp.maximum(nu2 + nv2 - 2.0 * dot_uv, 0.0))
    nv = jnp.sqrt(nv2)
    denom = jnp.maximum(
        nv * euclid * jnp.sqrt(jnp.maximum(1.0 + nu2 * nv2 - 2.0 * dot_uv, EPS)),
        EPS)
    cos_angle = (dot_uv * (1.0 + nv2) - nv2 * (1.0 + nu2)) / denom      # (TB, 1)

    # positive-pair hyperbolic distance (reuses nu2/nv2/dot_uv).
    d_pos = _dist_pre(u, v, nu2, nv2, dot_uv)                           # (TB, 1)
    e_pos = jnp.exp(-d_pos)

    # ---- all negatives at once (no unrolled loop) ----
    # Replicate u rows num_neg times (b-major) via a 0/1 selector matmul on the MXU.
    row = lax.broadcasted_iota(jnp.int32, (tbn, tb), 0)
    col = lax.broadcasted_iota(jnp.int32, (tbn, tb), 1)
    lo = col * num_neg
    rep = ((row >= lo) & (row < lo + num_neg)).astype(jnp.float32)      # (TBN, TB)
    u_rep = jnp.dot(rep, u, preferred_element_type=jnp.float32)         # (TBN, Dout)

    x2_rep = jnp.sum(u_rep * u_rep, axis=-1, keepdims=True)
    xy_n = jnp.sum(u_rep * un, axis=-1, keepdims=True)
    d_neg = _dist_pre(u_rep, un, x2_rep, nun2, xy_n)                    # (TBN, 1)
    e_neg = jnp.exp(-d_neg)

    # Z1[b] = sum_n exp(-dist(u_b, u_neg_{b,n})) -- per-batch group sum, again as a
    # selector matmul (broadcast e_neg across lanes, take column 0 of the result).
    rowb = lax.broadcasted_iota(jnp.int32, (tb, tbn), 0)
    coli = lax.broadcasted_iota(jnp.int32, (tb, tbn), 1)
    lob = rowb * num_neg
    agg = ((coli >= lob) & (coli < lob + num_neg)).astype(jnp.float32)  # (TB, TBN)
    z1 = jnp.dot(agg, jnp.broadcast_to(e_neg, (tbn, d_out)),
                 preferred_element_type=jnp.float32)[:, 0:1]            # (TB, 1)

    # -log(e_pos / (Z1 + e_pos)) = log(Z1 + e_pos) + d_pos  (divide-free)
    ns = jnp.log(z1 + e_pos) + d_pos                                    # (TB, 1)

    out_ref[:, 0:1] = cos_angle
    out_ref[:, 1:2] = ns


def _pick_batch_block(b, max_tb=128):
    if b <= max_tb:
        return b
    tb = (max_tb // 8) * 8
    while tb >= 8:
        if b % tb == 0:
            return tb
        tb -= 8
    return b


def event_temprel_forward(w_ff_u, sequence, mask1, mask2, neg_seq, mask_u_neg,
                          *, num_neg, alpha, batch_block=None):
    B, S, d_in = sequence.shape
    d_out = w_ff_u.shape[0]

    tb = _pick_batch_block(B) if batch_block is None else batch_block
    assert B % tb == 0, "batch block must divide B"
    grid = (B // tb,)
    m = tb * (2 + num_neg)

    # Per-step VMEM footprint estimate (inputs + scratch), used to size the scoped
    # VMEM limit; capped at 64 MiB so the same config is legal on v7x (64 MiB/TC).
    blk_bytes = 4 * (tb * S * d_in * (1 + num_neg) + tb * S * (2 + num_neg)
                     + d_out * d_in + m * (d_in + d_out) + tb * 2)
    vmem_limit = int(min(64 * 2 ** 20, max(32 * 2 ** 20, 16 * blk_bytes)))

    out = pl.pallas_call(
        functools.partial(_event_kernel, num_neg=num_neg),
        out_shape=jax.ShapeDtypeStruct((B, 2), jnp.float32),
        grid_spec=pltpu.PrefetchScalarGridSpec(
            num_scalar_prefetch=0,
            grid=grid,
            in_specs=[
                pl.BlockSpec((tb, S, d_in), lambda i: (i, 0, 0)),
                pl.BlockSpec((tb, S, 1), lambda i: (i, 0, 0)),
                pl.BlockSpec((tb, S, 1), lambda i: (i, 0, 0)),
                # negatives stay in their ORIGINAL (B*num_neg, S, D) layout:
                pl.BlockSpec((tb * num_neg, S, d_in), lambda i: (i, 0, 0)),
                pl.BlockSpec((tb * num_neg, S, 1), lambda i: (i, 0, 0)),
                pl.BlockSpec((d_out, d_in), lambda i: (0, 0)),
            ],
            out_specs=pl.BlockSpec((tb, 2), lambda i: (i, 0)),
            scratch_shapes=[
                pltpu.VMEM((m, d_in), jnp.float32),   # stacked [u;v;negs] pre-vectors
                pltpu.VMEM((m, d_out), jnp.float32),  # stacked Mobius matvec results
            ],
        ),
        compiler_params=pltpu.CompilerParams(
            dimension_semantics=("parallel",),
            vmem_limit_bytes=vmem_limit,
        ),
    )(sequence, mask1, mask2, neg_seq, mask_u_neg, w_ff_u)

    cos_angle = out[:, 0]
    ns_loss = out[:, 1]
    # TODO(synk): arccos has no Mosaic lowering; the (B,)-sized arccos and the final
    # scalar mean stay in plain JAX.
    score = jnp.arccos(cos_angle)
    return jnp.mean(2.0 * (1.0 - alpha) * score + 2.0 * alpha * ns_loss)


# ------------------------- pure-JAX reference (for a sanity check) -------------------------
def _reference_forward(w, seq, m1, m2, neg, mneg, *, num_neg, alpha):
    hi = jax.lax.Precision.HIGHEST

    def artanh(x):
        x = jnp.clip(x, -1.0 + ATANH_CLAMP, 1.0 - ATANH_CLAMP)
        return 0.5 * jnp.log((1.0 + x) / (1.0 - x))

    def expmap0(x):
        n = jnp.maximum(jnp.sqrt(jnp.sum(x * x, -1, keepdims=True)), EPS)
        return jnp.tanh(n) * x / n

    def mobius_matvec(w, x):
        xn = jnp.maximum(jnp.sqrt(jnp.sum(x * x, -1, keepdims=True)), EPS)
        mx = jnp.dot(x, w.T, precision=hi)
        mxn = jnp.maximum(jnp.sqrt(jnp.sum(mx * mx, -1, keepdims=True)), EPS)
        res = jnp.tanh(mxn / xn * artanh(xn)) * mx / mxn
        return jnp.where(jnp.sum(jnp.abs(mx), -1, keepdims=True) == 0.0, 0.0, res)

    def dist(x, y):
        x2 = jnp.sum(x * x, -1, keepdims=True)
        y2 = jnp.sum(y * y, -1, keepdims=True)
        xy = jnp.sum(x * y, -1, keepdims=True)
        num = (1.0 - 2.0 * xy + y2) * (-x) + (1.0 - x2) * y
        den = jnp.maximum(1.0 - 2.0 * xy + x2 * y2, EPS)
        ma = num / den
        return 2.0 * artanh(jnp.sqrt(jnp.sum(ma * ma, -1, keepdims=True)))

    B = seq.shape[0]
    proj = expmap0(seq)
    u = mobius_matvec(w, jnp.sum(proj * m1, 1))
    v = mobius_matvec(w, jnp.sum(proj * m2, 1))
    nu = jnp.sqrt(jnp.sum(u * u, 1))
    nv = jnp.sqrt(jnp.sum(v * v, 1))
    euclid = jnp.sqrt(jnp.sum((u - v) ** 2, 1))
    duv = jnp.sum(u * v, 1)
    cos = (duv * (1 + nv ** 2) - nv ** 2 * (1 + nu ** 2)) / (
        nv * euclid * jnp.sqrt(1 + nu ** 2 * nv ** 2 - 2 * duv))
    ang = jnp.arccos(cos)
    nproj = expmap0(neg)
    uneg = mobius_matvec(w, jnp.sum(nproj * mneg, 1)).reshape(B, num_neg, -1)
    dsq = dist(u, v)[:, 0]
    e = jnp.exp(-dsq)
    z1 = jnp.zeros_like(e)
    for n in range(num_neg):
        z1 = z1 + jnp.exp(-dist(u, uneg[:, n, :])[:, 0])
    ns = -jnp.log(e / (z1 + e))
    return jnp.mean(2 * (1 - alpha) * ang + 2 * alpha * ns)


if __name__ == "__main__":
    B, S, D_IN, D_OUT, NUM_NEG = 2, 8, 32, 64, 2
    ALPHA = 0.5

    key = jax.random.PRNGKey(0)
    k_w, k_seq, k_neg = jax.random.split(key, 3)

    # Parameter: W_ff_u ~ Uniform(-0.05, 0.05), shape (dim_out, dim_in)
    w_ff_u = jax.random.uniform(k_w, (D_OUT, D_IN), jnp.float32, -0.05, 0.05)

    # Inputs consistent with the forward signature
    sequence = 0.1 * jax.random.normal(k_seq, (B, S, D_IN), jnp.float32)
    neg_seq = 0.1 * jax.random.normal(k_neg, (B * NUM_NEG, S, D_IN), jnp.float32)

    # Event-span masks (one position each), broadcast over the feature dim
    mask1 = jnp.zeros((B, S, 1), jnp.float32).at[:, 1, 0].set(1.0)
    mask2 = jnp.zeros((B, S, 1), jnp.float32).at[:, 4, 0].set(1.0)
    mask_u_neg = jnp.zeros((B * NUM_NEG, S, 1), jnp.float32).at[:, 2, 0].set(1.0)

    fwd = jax.jit(functools.partial(event_temprel_forward,
                                    num_neg=NUM_NEG, alpha=ALPHA))
    loss = fwd(w_ff_u, sequence, mask1, mask2, neg_seq, mask_u_neg)
    jax.block_until_ready(loss)

    ref = _reference_forward(w_ff_u, sequence, mask1, mask2, neg_seq, mask_u_neg,
                             num_neg=NUM_NEG, alpha=ALPHA)
    err = abs(float(loss) - float(ref))
    assert err <= 1e-3 + 1e-2 * abs(float(ref)), (float(loss), float(ref))
    print("KERNEL_OK")
</pallas_src>

<mosaic_0001>
module attributes {stable_mosaic.version = 11 : i64} {
  func.func @_event_kernel(%arg0: i32, %arg1: memref<2x8x32xf32, #tpu.memory_space<vmem>>, %arg2: memref<2x8x1xf32, #tpu.memory_space<vmem>>, %arg3: memref<2x8x1xf32, #tpu.memory_space<vmem>>, %arg4: memref<4x8x32xf32, #tpu.memory_space<vmem>>, %arg5: memref<4x8x1xf32, #tpu.memory_space<vmem>>, %arg6: memref<64x32xf32, #tpu.memory_space<vmem>>, %arg7: memref<2x2xf32, #tpu.memory_space<vmem>>, %arg8: memref<8x32xf32, #tpu.memory_space<vmem>>, %arg9: memref<8x64xf32, #tpu.memory_space<vmem>>) attributes {dimension_semantics = [#tpu.dimension_semantics<parallel>], iteration_bounds = array<i64: 1>, scalar_prefetch = 0 : i64, scratch_operands = 2 : i64, tpu.core_type = #tpu.core_type<tc>, window_params = [{transform_indices = @transform_0, window_bounds = array<i64: 2, 8, 32>}, {transform_indices = @transform_1, window_bounds = array<i64: 2, 8, 1>}, {transform_indices = @transform_2, window_bounds = array<i64: 2, 8, 1>}, {transform_indices = @transform_3, window_bounds = array<i64: 4, 8, 32>}, {transform_indices = @transform_4, window_bounds = array<i64: 4, 8, 1>}, {pipeline_mode = #tpu.pipeline_mode<synchronous>, transform_indices = @transform_5, window_bounds = array<i64: 64, 32>}, {transform_indices = @transform_6, window_bounds = array<i64: 2, 2>}]} {
    %c0 = arith.constant 0 : index
    %c0_0 = arith.constant 0 : index
    %c0_1 = arith.constant 0 : index
    %0 = vector.load %arg1[%c0, %c0_0, %c0_1] : memref<2x8x32xf32, #tpu.memory_space<vmem>>, vector<2x8x32xf32>
    %c0_2 = arith.constant 0 : index
    %c0_3 = arith.constant 0 : index
    %c0_4 = arith.constant 0 : index
    %1 = vector.load %arg4[%c0_2, %c0_3, %c0_4] : memref<4x8x32xf32, #tpu.memory_space<vmem>>, vector<4x8x32xf32>
    %c0_5 = arith.constant 0 : index
    %c0_6 = arith.constant 0 : index
    %c0_7 = arith.constant 0 : index
    %2 = vector.load %arg2[%c0_5, %c0_6, %c0_7] : memref<2x8x1xf32, #tpu.memory_space<vmem>>, vector<2x8x1xf32>
    %c0_8 = arith.constant 0 : index
    %c0_9 = arith.constant 0 : index
    %c0_10 = arith.constant 0 : index
    %3 = vector.load %arg3[%c0_8, %c0_9, %c0_10] : memref<2x8x1xf32, #tpu.memory_space<vmem>>, vector<2x8x1xf32>
    %c0_11 = arith.constant 0 : index
    %c0_12 = arith.constant 0 : index
    %c0_13 = arith.constant 0 : index
    %4 = vector.load %arg5[%c0_11, %c0_12, %c0_13] : memref<4x8x1xf32, #tpu.memory_space<vmem>>, vector<4x8x1xf32>
    %c0_14 = arith.constant 0 : index
    %c0_15 = arith.constant 0 : index
    %5 = vector.load %arg6[%c0_14, %c0_15] : memref<64x32xf32, #tpu.memory_space<vmem>>, vector<64x32xf32>
    %6 = arith.mulf %0, %0 : vector<2x8x32xf32>
    %cst = arith.constant dense<0.000000e+00> : vector<2x8xf32>
    %7 = vector.multi_reduction <add>, %6, %cst [2] : vector<2x8x32xf32> to vector<2x8xf32>
    %8 = vector.shape_cast %7 : vector<2x8xf32> to vector<2x8x1xf32>
    %9 = math.sqrt %8 : vector<2x8x1xf32>
    %cst_16 = arith.constant 1.000000e-15 : f32
    %10 = vector.broadcast %cst_16 : f32 to vector<2x8x1xf32>
    %11 = arith.maximumf %9, %10 : vector<2x8x1xf32>
    %12 = math.tanh %11 : vector<2x8x1xf32>
    %13 = arith.divf %12, %11 : vector<2x8x1xf32>
    %14 = vector.broadcast %13 : vector<2x8x1xf32> to vector<2x8x32xf32>
    %15 = arith.mulf %14, %0 : vector<2x8x32xf32>
    %16 = arith.mulf %1, %1 : vector<4x8x32xf32>
    %cst_17 = arith.constant dense<0.000000e+00> : vector<4x8xf32>
    %17 = vector.multi_reduction <add>, %16, %cst_17 [2] : vector<4x8x32xf32> to vector<4x8xf32>
    %18 = vector.shape_cast %17 : vector<4x8xf32> to vector<4x8x1xf32>
    %19 = math.sqrt %18 : vector<4x8x1xf32>
    %cst_18 = arith.constant 1.000000e-15 : f32
    %20 = vector.broadcast %cst_18 : f32 to vector<4x8x1xf32>
    %21 = arith.maximumf %19, %20 : vector<4x8x1xf32>
    %22 = math.tanh %21 : vector<4x8x1xf32>
    %23 = arith.divf %22, %21 : vector<4x8x1xf32>
    %24 = vector.broadcast %23 : vector<4x8x1xf32> to vector<4x8x32xf32>
    %25 = arith.mulf %24, %1 : vector<4x8x32xf32>
    %26 = vector.broadcast %2 : vector<2x8x1xf32> to vector<2x8x32xf32>
    %27 = arith.mulf %15, %26 : vector<2x8x32xf32>
    %cst_19 = arith.constant dense<0.000000e+00> : vector<2x32xf32>
    %28 = vector.multi_reduction <add>, %27, %cst_19 [1] : vector<2x8x32xf32> to vector<2x32xf32>
    %c0_20 = arith.constant 0 : index
    %c0_21 = arith.constant 0 : index
    %29 = vector.load %arg8[%c0_20, %c0_21] : memref<8x32xf32, #tpu.memory_space<vmem>>, vector<2x32xf32>
    tpu.vector_store %arg8[%c0_20, %c0_21], %28 {strides = array<i32>} : memref<8x32xf32, #tpu.memory_space<vmem>>, vector<2x32xf32>,
    %30 = vector.broadcast %3 : vector<2x8x1xf32> to vector<2x8x32xf32>
    %31 = arith.mulf %15, %30 : vector<2x8x32xf32>
    %cst_22 = arith.constant dense<0.000000e+00> : vector<2x32xf32>
    %32 = vector.multi_reduction <add>, %31, %cst_22 [1] : vector<2x8x32xf32> to vector<2x32xf32>
    %c2 = arith.constant 2 : index
    %c0_23 = arith.constant 0 : index
    %33 = vector.load %arg8[%c2, %c0_23] : memref<8x32xf32, #tpu.memory_space<vmem>>, vector<2x32xf32>
    tpu.vector_store %arg8[%c2, %c0_23], %32 {strides = array<i32>} : memref<8x32xf32, #tpu.memory_space<vmem>>, vector<2x32xf32>,
    %34 = vector.broadcast %4 : vector<4x8x1xf32> to vector<4x8x32xf32>
    %35 = arith.mulf %25, %34 : vector<4x8x32xf32>
    %cst_24 = arith.constant dense<0.000000e+00> : vector<4x32xf32>
    %36 = vector.multi_reduction <add>, %35, %cst_24 [1] : vector<4x8x32xf32> to vector<4x32xf32>
    %c4 = arith.constant 4 : index
    %c0_25 = arith.constant 0 : index
    %37 = vector.load %arg8[%c4, %c0_25] : memref<8x32xf32, #tpu.memory_space<vmem>>, vector<4x32xf32>
    tpu.vector_store %arg8[%c4, %c0_25], %36 {strides = array<i32>} : memref<8x32xf32, #tpu.memory_space<vmem>>, vector<4x32xf32>,
    %c0_26 = arith.constant 0 : index
    %c0_27 = arith.constant 0 : index
    %38 = vector.load %arg8[%c0_26, %c0_27] : memref<8x32xf32, #tpu.memory_space<vmem>>, vector<8x32xf32>
    %39 = arith.mulf %38, %38 : vector<8x32xf32>
    %cst_28 = arith.constant dense<0.000000e+00> : vector<8xf32>
    %40 = vector.multi_reduction <add>, %39, %cst_28 [1] : vector<8x32xf32> to vector<8xf32>
    %41 = vector.shape_cast %40 : vector<8xf32> to vector<8x1xf32>
    %42 = math.sqrt %41 : vector<8x1xf32>
    %cst_29 = arith.constant 1.000000e-15 : f32
    %43 = vector.broadcast %cst_29 : f32 to vector<8x1xf32>
    %44 = arith.maximumf %42, %43 : vector<8x1xf32>
    %cst_30 = arith.constant dense<0.000000e+00> : vector<8x64xf32>
    %45 = tpu.matmul %38, %5, %cst_30 {dimension_numbers = #tpu.dot_dimension_numbers<[1], [1], [0], [0], [0, 0, 1, 0], [], []>} : vector<8x32xf32>, vector<64x32xf32>, vector<8x64xf32> -> vector<8x64xf32>
    %46 = arith.mulf %45, %45 : vector<8x64xf32>
    %cst_31 = arith.constant dense<0.000000e+00> : vector<8xf32>
    %47 = vector.multi_reduction <add>, %46, %cst_31 [1] : vector<8x64xf32> to vector<8xf32>
    %48 = vector.shape_cast %47 : vector<8xf32> to vector<8x1xf32>
    %49 = math.sqrt %48 : vector<8x1xf32>
    %cst_32 = arith.constant 1.000000e-15 : f32
    %50 = vector.broadcast %cst_32 : f32 to vector<8x1xf32>
    %51 = arith.maximumf %49, %50 : vector<8x1xf32>
    %52 = arith.divf %51, %44 : vector<8x1xf32>
    %cst_33 = arith.constant -0.99999988 : f32
    %cst_34 = arith.constant 0.99999988 : f32
    %53 = vector.broadcast %cst_33 : f32 to vector<8x1xf32>
    %54 = arith.maximumf %53, %44 : vector<8x1xf32>
    %55 = vector.broadcast %cst_34 : f32 to vector<8x1xf32>
    %56 = arith.minimumf %55, %54 : vector<8x1xf32>
    %cst_35 = arith.constant 1.000000e+00 : f32
    %57 = vector.broadcast %cst_35 : f32 to vector<8x1xf32>
    %58 = arith.addf %57, %56 : vector<8x1xf32>
    %59 = math.log %58 : vector<8x1xf32>
    %cst_36 = arith.constant 1.000000e+00 : f32
    %60 = vector.broadcast %cst_36 : f32 to vector<8x1xf32>
    %61 = arith.subf %60, %56 : vector<8x1xf32>
    %62 = math.log %61 : vector<8x1xf32>
    %63 = arith.subf %59, %62 : vector<8x1xf32>
    %cst_37 = arith.constant 5.000000e-01 : f32
    %64 = vector.broadcast %cst_37 : f32 to vector<8x1xf32>
    %65 = arith.mulf %64, %63 : vector<8x1xf32>
    %66 = arith.mulf %52, %65 : vector<8x1xf32>
    %67 = math.tanh %66 : vector<8x1xf32>
    %68 = vector.broadcast %51 : vector<8x1xf32> to vector<8x64xf32>
    %69 = arith.divf %45, %68 : vector<8x64xf32>
    %70 = vector.broadcast %67 : vector<8x1xf32> to vector<8x64xf32>
    %71 = arith.mulf %70, %69 : vector<8x64xf32>
    %cst_38 = arith.constant 0.000000e+00 : f32
    %72 = vector.broadcast %cst_38 : f32 to vector<8x1xf32>
    %73 = arith.cmpf oeq, %48, %72 : vector<8x1xf32>
    %cst_39 = arith.constant 0.000000e+00 : f32
    %74 = vector.shape_cast %73 : vector<8x1xi1> to vector<8x1xi1>
    %75 = vector.broadcast %74 : vector<8x1xi1> to vector<8x64xi1>
    %76 = vector.broadcast %cst_39 : f32 to vector<8x64xf32>
    %77 = arith.select %75, %76, %71 : vector<8x64xi1>, vector<8x64xf32>
    %c0_40 = arith.constant 0 : index
    %c0_41 = arith.constant 0 : index
    %78 = vector.load %arg9[%c0_40, %c0_41] : memref<8x64xf32, #tpu.memory_space<vmem>>, vector<8x64xf32>
    tpu.vector_store %arg9[%c0_40, %c0_41], %77 {strides = array<i32>} : memref<8x64xf32, #tpu.memory_space<vmem>>, vector<8x64xf32>,
    %c0_42 = arith.constant 0 : index
    %c0_43 = arith.constant 0 : index
    %79 = vector.load %arg9[%c0_42, %c0_43] : memref<8x64xf32, #tpu.memory_space<vmem>>, vector<2x64xf32>
    %c2_44 = arith.constant 2 : index
    %c0_45 = arith.constant 0 : index
    %80 = vector.load %arg9[%c2_44, %c0_45] : memref<8x64xf32, #tpu.memory_space<vmem>>, vector<2x64xf32>
    %c4_46 = arith.constant 4 : index
    %c0_47 = arith.constant 0 : index
    %81 = vector.load %arg9[%c4_46, %c0_47] : memref<8x64xf32, #tpu.memory_space<vmem>>, vector<4x64xf32>
    %82 = arith.mulf %79, %79 : vector<2x64xf32>
    %cst_48 = arith.constant dense<0.000000e+00> : vector<2xf32>
    %83 = vector.multi_reduction <add>, %82, %cst_48 [1] : vector<2x64xf32> to vector<2xf32>
    %84 = vector.shape_cast %83 : vector<2xf32> to vector<2x1xf32>
    %85 = arith.mulf %80, %80 : vector<2x64xf32>
    %cst_49 = arith.constant dense<0.000000e+00> : vector<2xf32>
    %86 = vector.multi_reduction <add>, %85, %cst_49 [1] : vector<2x64xf32> to vector<2xf32>
    %87 = vector.shape_cast %86 : vector<2xf32> to vector<2x1xf32>
    %88 = arith.mulf %81, %81 : vector<4x64xf32>
    %cst_50 = arith.constant dense<0.000000e+00> : vector<4xf32>
    %89 = vector.multi_reduction <add>, %88, %cst_50 [1] : vector<4x64xf32> to vector<4xf32>
    %90 = vector.shape_cast %89 : vector<4xf32> to vector<4x1xf32>
    %91 = arith.mulf %79, %80 : vector<2x64xf32>
    %cst_51 = arith.constant dense<0.000000e+00> : vector<2xf32>
    %92 = vector.multi_reduction <add>, %91, %cst_51 [1] : vector<2x64xf32> to vector<2xf32>
    %93 = vector.shape_cast %92 : vector<2xf32> to vector<2x1xf32>
    %94 = arith.addf %84, %87 : vector<2x1xf32>
    %cst_52 = arith.constant 2.000000e+00 : f32
    %95 = vector.broadcast %cst_52 : f32 to vector<2x1xf32>
    %96 = arith.mulf %95, %93 : vector<2x1xf32>
    %97 = arith.subf %94, %96 : vector<2x1xf32>
    %cst_53 = arith.constant 0.000000e+00 : f32
    %98 = vector.broadcast %cst_53 : f32 to vector<2x1xf32>
    %99 = arith.maximumf %97, %98 : vector<2x1xf32>
    %100 = math.sqrt %99 : vector<2x1xf32>
    %101 = math.sqrt %87 : vector<2x1xf32>
    %102 = arith.mulf %101, %100 : vector<2x1xf32>
    %103 = arith.mulf %84, %87 : vector<2x1xf32>
    %cst_54 = arith.constant 1.000000e+00 : f32
    %104 = vector.broadcast %cst_54 : f32 to vector<2x1xf32>
    %105 = arith.addf %104, %103 : vector<2x1xf32>
    %cst_55 = arith.constant 2.000000e+00 : f32
    %106 = vector.broadcast %cst_55 : f32 to vector<2x1xf32>
    %107 = arith.mulf %106, %93 : vector<2x1xf32>
    %108 = arith.subf %105, %107 : vector<2x1xf32>
    %cst_56 = arith.constant 1.000000e-15 : f32
    %109 = vector.broadcast %cst_56 : f32 to vector<2x1xf32>
    %110 = arith.maximumf %108, %109 : vector<2x1xf32>
    %111 = math.sqrt %110 : vector<2x1xf32>
    %112 = arith.mulf %102, %111 : vector<2x1xf32>
    %cst_57 = arith.constant 1.000000e-15 : f32
    %113 = vector.broadcast %cst_57 : f32 to vector<2x1xf32>
    %114 = arith.maximumf %112, %113 : vector<2x1xf32>
    %cst_58 = arith.constant 1.000000e+00 : f32
    %115 = vector.broadcast %cst_58 : f32 to vector<2x1xf32>
    %116 = arith.addf %115, %87 : vector<2x1xf32>
    %117 = arith.mulf %93, %116 : vector<2x1xf32>
    %cst_59 = arith.constant 1.000000e+00 : f32
    %118 = vector.broadcast %cst_59 : f32 to vector<2x1xf32>
    %119 = arith.addf %118, %84 : vector<2x1xf32>
    %120 = arith.mulf %87, %119 : vector<2x1xf32>
    %121 = arith.subf %117, %120 : vector<2x1xf32>
    %122 = arith.divf %121, %114 : vector<2x1xf32>
    %cst_60 = arith.constant 2.000000e+00 : f32
    %123 = vector.broadcast %cst_60 : f32 to vector<2x1xf32>
    %124 = arith.mulf %123, %93 : vector<2x1xf32>
    %cst_61 = arith.constant 1.000000e+00 : f32
    %125 = vector.broadcast %cst_61 : f32 to vector<2x1xf32>
    %126 = arith.subf %125, %124 : vector<2x1xf32>
    %127 = arith.addf %126, %87 : vector<2x1xf32>
    %cst_62 = arith.constant 0.000000e+00 : f32
    %128 = vector.broadcast %cst_62 : f32 to vector<2x64xf32>
    %129 = arith.subf %128, %79 : vector<2x64xf32>
    %130 = vector.broadcast %127 : vector<2x1xf32> to vector<2x64xf32>
    %131 = arith.mulf %130, %129 : vector<2x64xf32>
    %cst_63 = arith.constant 1.000000e+00 : f32
    %132 = vector.broadcast %cst_63 : f32 to vector<2x1xf32>
    %133 = arith.subf %132, %84 : vector<2x1xf32>
    %134 = vector.broadcast %133 : vector<2x1xf32> to vector<2x64xf32>
    %135 = arith.mulf %134, %80 : vector<2x64xf32>
    %136 = arith.addf %131, %135 : vector<2x64xf32>
    %cst_64 = arith.constant 2.000000e+00 : f32
    %137 = vector.broadcast %cst_64 : f32 to vector<2x1xf32>
    %138 = arith.mulf %137, %93 : vector<2x1xf32>
    %cst_65 = arith.constant 1.000000e+00 : f32
    %139 = vector.broadcast %cst_65 : f32 to vector<2x1xf32>
    %140 = arith.subf %139, %138 : vector<2x1xf32>
    %141 = arith.mulf %84, %87 : vector<2x1xf32>
    %142 = arith.addf %140, %141 : vector<2x1xf32>
    %cst_66 = arith.constant 1.000000e-15 : f32
    %143 = vector.broadcast %cst_66 : f32 to vector<2x1xf32>
    %144 = arith.maximumf %142, %143 : vector<2x1xf32>
    %145 = vector.broadcast %144 : vector<2x1xf32> to vector<2x64xf32>
    %146 = arith.divf %136, %145 : vector<2x64xf32>
    %147 = arith.mulf %146, %146 : vector<2x64xf32>
    %cst_67 = arith.constant dense<0.000000e+00> : vector<2xf32>
    %148 = vector.multi_reduction <add>, %147, %cst_67 [1] : vector<2x64xf32> to vector<2xf32>
    %149 = vector.shape_cast %148 : vector<2xf32> to vector<2x1xf32>
    %150 = math.sqrt %149 : vector<2x1xf32>
    %cst_68 = arith.constant -0.99999988 : f32
    %cst_69 = arith.constant 0.99999988 : f32
    %151 = vector.broadcast %cst_68 : f32 to vector<2x1xf32>
    %152 = arith.maximumf %151, %150 : vector<2x1xf32>
    %153 = vector.broadcast %cst_69 : f32 to vector<2x1xf32>
    %154 = arith.minimumf %153, %152 : vector<2x1xf32>
    %cst_70 = arith.constant 1.000000e+00 : f32
    %155 = vector.broadcast %cst_70 : f32 to vector<2x1xf32>
    %156 = arith.addf %155, %154 : vector<2x1xf32>
    %157 = math.log %156 : vector<2x1xf32>
    %cst_71 = arith.constant 1.000000e+00 : f32
    %158 = vector.broadcast %cst_71 : f32 to vector<2x1xf32>
    %159 = arith.subf %158, %154 : vector<2x1xf32>
    %160 = math.log %159 : vector<2x1xf32>
    %161 = arith.subf %157, %160 : vector<2x1xf32>
    %cst_72 = arith.constant 5.000000e-01 : f32
    %162 = vector.broadcast %cst_72 : f32 to vector<2x1xf32>
    %163 = arith.mulf %162, %161 : vector<2x1xf32>
    %cst_73 = arith.constant 2.000000e+00 : f32
    %164 = vector.broadcast %cst_73 : f32 to vector<2x1xf32>
    %165 = arith.mulf %164, %163 : vector<2x1xf32>
    %cst_74 = arith.constant 0.000000e+00 : f32
    %166 = vector.broadcast %cst_74 : f32 to vector<2x1xf32>
    %167 = arith.subf %166, %165 : vector<2x1xf32>
    %168 = math.exp %167 : vector<2x1xf32>
    %169 = tpu.iota {dimensions = array<i32: 0>} : vector<4x2xi32>
    %170 = tpu.iota {dimensions = array<i32: 1>} : vector<4x2xi32>
    %c2_i32 = arith.constant 2 : i32
    %171 = vector.broadcast %c2_i32 : i32 to vector<4x2xi32>
    %172 = arith.muli %170, %171 : vector<4x2xi32>
    %173 = arith.cmpi sge, %169, %172 : vector<4x2xi32>
    %c2_i32_75 = arith.constant 2 : i32
    %174 = vector.broadcast %c2_i32_75 : i32 to vector<4x2xi32>
    %175 = arith.addi %172, %174 : vector<4x2xi32>
    %176 = arith.cmpi slt, %169, %175 : vector<4x2xi32>
    %177 = arith.andi %173, %176 : vector<4x2xi1>
    %178 = arith.extui %177 : vector<4x2xi1> to vector<4x2xi32>
    %179 = arith.sitofp %178 : vector<4x2xi32> to vector<4x2xf32>
    %cst_76 = arith.constant dense<0.000000e+00> : vector<4x64xf32>
    %180 = tpu.matmul %179, %79, %cst_76 {dimension_numbers = #tpu.dot_dimension_numbers<[1], [0], [0], [1], [0, 0, 1, 1], [], []>} : vector<4x2xf32>, vector<2x64xf32>, vector<4x64xf32> -> vector<4x64xf32>
    %181 = arith.mulf %180, %180 : vector<4x64xf32>
    %cst_77 = arith.constant dense<0.000000e+00> : vector<4xf32>
    %182 = vector.multi_reduction <add>, %181, %cst_77 [1] : vector<4x64xf32> to vector<4xf32>
    %183 = vector.shape_cast %182 : vector<4xf32> to vector<4x1xf32>
    %184 = arith.mulf %180, %81 : vector<4x64xf32>
    %cst_78 = arith.constant dense<0.000000e+00> : vector<4xf32>
    %185 = vector.multi_reduction <add>, %184, %cst_78 [1] : vector<4x64xf32> to vector<4xf32>
    %186 = vector.shape_cast %185 : vector<4xf32> to vector<4x1xf32>
    %cst_79 = arith.constant 2.000000e+00 : f32
    %187 = vector.broadcast %cst_79 : f32 to vector<4x1xf32>
    %188 = arith.mulf %187, %186 : vector<4x1xf32>
    %cst_80 = arith.constant 1.000000e+00 : f32
    %189 = vector.broadcast %cst_80 : f32 to vector<4x1xf32>
    %190 = arith.subf %189, %188 : vector<4x1xf32>
    %191 = arith.addf %190, %90 : vector<4x1xf32>
    %cst_81 = arith.constant 0.000000e+00 : f32
    %192 = vector.broadcast %cst_81 : f32 to vector<4x64xf32>
    %193 = arith.subf %192, %180 : vector<4x64xf32>
    %194 = vector.broadcast %191 : vector<4x1xf32> to vector<4x64xf32>
    %195 = arith.mulf %194, %193 : vector<4x64xf32>
    %cst_82 = arith.constant 1.000000e+00 : f32
    %196 = vector.broadcast %cst_82 : f32 to vector<4x1xf32>
    %197 = arith.subf %196, %183 : vector<4x1xf32>
    %198 = vector.broadcast %197 : vector<4x1xf32> to vector<4x64xf32>
    %199 = arith.mulf %198, %81 : vector<4x64xf32>
    %200 = arith.addf %195, %199 : vector<4x64xf32>
    %cst_83 = arith.constant 2.000000e+00 : f32
    %201 = vector.broadcast %cst_83 : f32 to vector<4x1xf32>
    %202 = arith.mulf %201, %186 : vector<4x1xf32>
    %cst_84 = arith.constant 1.000000e+00 : f32
    %203 = vector.broadcast %cst_84 : f32 to vector<4x1xf32>
    %204 = arith.subf %203, %202 : vector<4x1xf32>
    %205 = arith.mulf %183, %90 : vector<4x1xf32>
    %206 = arith.addf %204, %205 : vector<4x1xf32>
    %cst_85 = arith.constant 1.000000e-15 : f32
    %207 = vector.broadcast %cst_85 : f32 to vector<4x1xf32>
    %208 = arith.maximumf %206, %207 : vector<4x1xf32>
    %209 = vector.broadcast %208 : vector<4x1xf32> to vector<4x64xf32>
    %210 = arith.divf %200, %209 : vector<4x64xf32>
    %211 = arith.mulf %210, %210 : vector<4x64xf32>
    %cst_86 = arith.constant dense<0.000000e+00> : vector<4xf32>
    %212 = vector.multi_reduction <add>, %211, %cst_86 [1] : vector<4x64xf32> to vector<4xf32>
    %213 = vector.shape_cast %212 : vector<4xf32> to vector<4x1xf32>
    %214 = math.sqrt %213 : vector<4x1xf32>
    %cst_87 = arith.constant -0.99999988 : f32
    %cst_88 = arith.constant 0.99999988 : f32
    %215 = vector.broadcast %cst_87 : f32 to vector<4x1xf32>
    %216 = arith.maximumf %215, %214 : vector<4x1xf32>
    %217 = vector.broadcast %cst_88 : f32 to vector<4x1xf32>
    %218 = arith.minimumf %217, %216 : vector<4x1xf32>
    %cst_89 = arith.constant 1.000000e+00 : f32
    %219 = vector.broadcast %cst_89 : f32 to vector<4x1xf32>
    %220 = arith.addf %219, %218 : vector<4x1xf32>
    %221 = math.log %220 : vector<4x1xf32>
    %cst_90 = arith.constant 1.000000e+00 : f32
    %222 = vector.broadcast %cst_90 : f32 to vector<4x1xf32>
    %223 = arith.subf %222, %218 : vector<4x1xf32>
    %224 = math.log %223 : vector<4x1xf32>
    %225 = arith.subf %221, %224 : vector<4x1xf32>
    %cst_91 = arith.constant 5.000000e-01 : f32
    %226 = vector.broadcast %cst_91 : f32 to vector<4x1xf32>
    %227 = arith.mulf %226, %225 : vector<4x1xf32>
    %cst_92 = arith.constant 2.000000e+00 : f32
    %228 = vector.broadcast %cst_92 : f32 to vector<4x1xf32>
    %229 = arith.mulf %228, %227 : vector<4x1xf32>
    %cst_93 = arith.constant 0.000000e+00 : f32
    %230 = vector.broadcast %cst_93 : f32 to vector<4x1xf32>
    %231 = arith.subf %230, %229 : vector<4x1xf32>
    %232 = math.exp %231 : vector<4x1xf32>
    %233 = tpu.iota {dimensions = array<i32: 0>} : vector<2x4xi32>
    %234 = tpu.iota {dimensions = array<i32: 1>} : vector<2x4xi32>
    %c2_i32_94 = arith.constant 2 : i32
    %235 = vector.broadcast %c2_i32_94 : i32 to vector<2x4xi32>
    %236 = arith.muli %233, %235 : vector<2x4xi32>
    %237 = arith.cmpi sge, %234, %236 : vector<2x4xi32>
    %c2_i32_95 = arith.constant 2 : i32
    %238 = vector.broadcast %c2_i32_95 : i32 to vector<2x4xi32>
    %239 = arith.addi %236, %238 : vector<2x4xi32>
    %240 = arith.cmpi slt, %234, %239 : vector<2x4xi32>
    %241 = arith.andi %237, %240 : vector<2x4xi1>
    %242 = arith.extui %241 : vector<2x4xi1> to vector<2x4xi32>
    %243 = arith.sitofp %242 : vector<2x4xi32> to vector<2x4xf32>
    %244 = vector.shape_cast %232 : vector<4x1xf32> to vector<4x1xf32>
    %245 = vector.broadcast %244 : vector<4x1xf32> to vector<4x64xf32>
    %cst_96 = arith.constant dense<0.000000e+00> : vector<2x64xf32>
    %246 = tpu.matmul %243, %245, %cst_96 {dimension_numbers = #tpu.dot_dimension_numbers<[1], [0], [0], [1], [0, 0, 1, 1], [], []>} : vector<2x4xf32>, vector<4x64xf32>, vector<2x64xf32> -> vector<2x64xf32>
    %247 = vector.extract_strided_slice %246 {offsets = [0, 0], sizes = [2, 1], strides = [1, 1]} : vector<2x64xf32> to vector<2x1xf32>
    %248 = arith.addf %247, %168 : vector<2x1xf32>
    %249 = math.log %248 : vector<2x1xf32>
    %250 = arith.addf %249, %165 : vector<2x1xf32>
    %c0_97 = arith.constant 0 : index
    %c0_98 = arith.constant 0 : index
    %251 = vector.load %arg7[%c0_97, %c0_98] : memref<2x2xf32, #tpu.memory_space<vmem>>, vector<2x1xf32>
    tpu.vector_store %arg7[%c0_97, %c0_98], %122 {strides = array<i32>} : memref<2x2xf32, #tpu.memory_space<vmem>>, vector<2x1xf32>,
    %c0_99 = arith.constant 0 : index
    %c1 = arith.constant 1 : index
    %252 = vector.load %arg7[%c0_99, %c1] : memref<2x2xf32, #tpu.memory_space<vmem>>, vector<2x1xf32>
    tpu.vector_store %arg7[%c0_99, %c1], %250 {strides = array<i32>} : memref<2x2xf32, #tpu.memory_space<vmem>>, vector<2x1xf32>,
    return
  }
  func.func @transform_0(%arg0: i32) -> (i32, i32, i32) {
    %c0_i32 = arith.constant 0 : i32
    %c0_i32_0 = arith.constant 0 : i32
    %c0_i32_1 = arith.constant 0 : i32
    return %arg0, %c0_i32, %c0_i32_0 : i32, i32, i32
  }
  func.func @transform_1(%arg0: i32) -> (i32, i32, i32) {
    %c0_i32 = arith.constant 0 : i32
    %c0_i32_0 = arith.constant 0 : i32
    %c0_i32_1 = arith.constant 0 : i32
    return %arg0, %c0_i32, %c0_i32_0 : i32, i32, i32
  }
  func.func @transform_2(%arg0: i32) -> (i32, i32, i32) {
    %c0_i32 = arith.constant 0 : i32
    %c0_i32_0 = arith.constant 0 : i32
    %c0_i32_1 = arith.constant 0 : i32
    return %arg0, %c0_i32, %c0_i32_0 : i32, i32, i32
  }
  func.func @transform_3(%arg0: i32) -> (i32, i32, i32) {
    %c0_i32 = arith.constant 0 : i32
    %c0_i32_0 = arith.constant 0 : i32
    %c0_i32_1 = arith.constant 0 : i32
    return %arg0, %c0_i32, %c0_i32_0 : i32, i32, i32
  }
  func.func @transform_4(%arg0: i32) -> (i32, i32, i32) {
    %c0_i32 = arith.constant 0 : i32
    %c0_i32_0 = arith.constant 0 : i32
    %c0_i32_1 = arith.constant 0 : i32
    return %arg0, %c0_i32, %c0_i32_0 : i32, i32, i32
  }
  func.func @transform_5(%arg0: i32) -> (i32, i32) {
    %c0_i32 = arith.constant 0 : i32
    %c0_i32_0 = arith.constant 0 : i32
    %c0_i32_1 = arith.constant 0 : i32
    return %c0_i32, %c0_i32_0 : i32, i32
  }
  func.func @transform_6(%arg0: i32) -> (i32, i32) {
    %c0_i32 = arith.constant 0 : i32
    %c0_i32_0 = arith.constant 0 : i32
    return %arg0, %c0_i32 : i32, i32
  }
}

</mosaic_0001>

<bundles_post_ra>
// kernel: event_temprel_forward.1
= control target key start
LH: loop header
LB: loop body
LE: loop exit
PB: predicated region body
PF: predicated region fallthrough
CT: control target
= control target key end

     0   :  { %vm47_vm0 = vcmask 261120   ;;  %v909_v3 = vmov 0   ;;  %s911_s11 = smov 1   ;;  %s1311_s3 = inlined_call_operand.vmem [shape: f32[4,8,32], index: 3, kind: input, shape index: {}]   ;;  %s1312_s0 = inlined_call_operand.vmem [shape: f32[2,8,32], index: 0, kind: input, shape index: {}]   ;;  %s1313_s4 = inlined_call_operand.vmem [shape: f32[4,8,1], index: 4, kind: input, shape index: {}]   ;;  %s1314_s1 = inlined_call_operand.vmem [shape: f32[2,8,1], index: 1, kind: input, shape index: {}]   ;;  %s1315_s2 = inlined_call_operand.vmem [shape: f32[2,8,1], index: 2, kind: input, shape index: {}]   ;;  %s1316_s5 = inlined_call_operand.vmem [shape: f32[64,32], index: 5, kind: input, shape index: {}]   ;;  %s1317_s6 = inlined_call_operand.vmem [shape: f32[2,2], index: 6, kind: output, shape index: {}]  }
   0x1   :  { %v950_v0 = vld [vmem:[%s1311_s3 + $0x10] sm:$0xff]  ;;  %v955_v1 = vld [vmem:[%s1311_s3] sm:$0xff]  ;;  %v960_v2 = vld [vmem:[%s1312_s0 + $0x8] sm:$0xff]  ;;  %827 = vset.pattern.permute.xlu1 %v909_v3  ;;  %826 = vset.pattern.permute.xlu0 %v909_v3 }
   0x2   :  { %v116_v4 = vmul.f32 %v950_v0, %v950_v0  ;;  %v114_v5 = vmul.f32 %v955_v1, %v955_v1  ;;  %v46_v6 = vmul.f32 %v960_v2, %v960_v2  ;;  %828 = vset.pattern.permute.xlu2 %v909_v3  ;;  %v971_v7 = vld [vmem:[%s1311_s3 + $0x8] sm:$0xff]  ;;  %v976_v8 = vld [vmem:[%s1312_s0] sm:$0xff]  ;;  %v984_v12 = vld [vmem:[%s1311_s3 + $0x18] sm:$0xff] }
   0x3   :  { %v115_v13 = vmul.f32 %v971_v7, %v971_v7  ;;  %v45_v14 = vmul.f32 %v976_v8, %v976_v8  ;;  %v117_v15 = vmul.f32 %v984_v12, %v984_v12  ;;  %v33_v19 = vld [vmem:[%s1313_s4] sm:$0xff]  ;;  %v34_v20 = vld [vmem:[%s1313_s4 + $0x8] sm:$0xff]  ;;  %v35_v21 = vld [vmem:[%s1313_s4 + $0x10] sm:$0xff] }
   0x4   :  { %v124_v9 = vsel %vm47_vm0, %v116_v4, 0.0  ;;  %v118_v10 = vsel %vm47_vm0, %v114_v5, 0.0  ;;  %v51_v11 = vsel %vm47_vm0, %v46_v6, 0.0  ;;  %v36_v22 = vld [vmem:[%s1313_s4 + $0x18] sm:$0xff]  ;;  %v30_v23 = vld [vmem:[%s1314_s1 + $0x8] sm:$0xff]  ;;  %v29_v24 = vld [vmem:[%s1314_s1] sm:$0xff] }
   0x5   :  { %125 = vadd.xlane.f32.xlu1 %v124_v9  ;;  %119 = vadd.xlane.f32.xlu0 %v118_v10  ;;  %v121_v16 = vsel %vm47_vm0, %v115_v13, 0.0  ;;  %v48_v17 = vsel %vm47_vm0, %v45_v14, 0.0  ;;  %v127_v18 = vsel %vm47_vm0, %v117_v15, 0.0  ;;  %v32_v25 = vld [vmem:[%s1315_s2 + $0x8] sm:$0xff]  ;;  %v31_v26 = vld [vmem:[%s1315_s2] sm:$0xff] }
   0x6   :  { %52 = vadd.xlane.f32.xlu2 %v51_v11 }
   0xd   :  { %122 = vadd.xlane.f32.xlu0 %v121_v16  ;;  %49 = vadd.xlane.f32.xlu1 %v48_v17 }
   0xe   :  { %128 = vadd.xlane.f32.xlu2 %v127_v18 }
  0x21   :  { %316 = vperm.xlu0 %826, %v33_v19  }
  0x26   :  { %321 = vperm.xlu1 %827, %v34_v20   ;;  %326 = vperm.xlu2 %828, %v35_v21  }
  0x29   :  { %331 = vperm.xlu0 %826, %v36_v22  }
  0x2e   :  { %257 = vperm.xlu1 %827, %v30_v23   ;;  %252 = vperm.xlu2 %828, %v29_v24  }
  0x36   :  { %290 = vperm.xlu1 %827, %v32_v25   ;;  %285 = vperm.xlu2 %828, %v31_v26  }
  0x78   :  { %v126_v27 = vpop.xlane.xlu1 %125  ;;  %v120_v28 = vpop.xlane.xlu0 %119 }
  0x79   :  { %829 = vrsqrt.f32 %v126_v27  ;;  %v53_v29 = vpop.xlane.xlu2 %52  ;;  %vm161_vm1 = vcmp.eq.f32.partialorder %v126_v27, inf  ;;  %vm163_vm2 = vcmp.eq.f32.partialorder %v126_v27, 0.0  ;;  %v164_v47 = vand.u32 2147483648, %v126_v27 }
  0x7a   :  { %831 = vrsqrt.f32 %v120_v28  ;;  %vm137_vm3 = vcmp.eq.f32.partialorder %v120_v28, inf  ;;  %vm139_vm4 = vcmp.eq.f32.partialorder %v120_v28, 0.0  ;;  %v140_v54 = vand.u32 2147483648, %v120_v28 }
  0x7b   :  { %833 = vrsqrt.f32 %v53_v29  ;;  %vm73_vm5 = vcmp.eq.f32.partialorder %v53_v29, inf  ;;  %vm75_vm6 = vcmp.eq.f32.partialorder %v53_v29, 0.0  ;;  %v76_v4 = vand.u32 2147483648, %v53_v29 }
  0x7f   :  { %v830_v30 = vpop.eup %829 }
  0x80   :  { %v832_v31 = vpop.eup %831  ;;  %v155_v32 = vmul.f32 %v830_v30, %v126_v27  ;;  %v1019_v33 = vpop.xlane.xlu0 %122 }
  0x81   :  { %v834_v34 = vpop.eup %833  ;;  %v131_v35 = vmul.f32 %v832_v31, %v120_v28  ;;  %835 = vrsqrt.f32 %v1019_v33  ;;  %v1022_v36 = vpop.xlane.xlu2 %128  ;;  %vm149_vm7 = vcmp.eq.f32.partialorder %v1019_v33, inf  ;;  %vm151_vm8 = vcmp.eq.f32.partialorder %v1019_v33, 0.0 }
  0x82   :  { %v1024_v37 = vpop.xlane.xlu1 %49  ;;  %v156_v38 = vmul.f32 %v830_v30, %v155_v32  ;;  %v67_v39 = vmul.f32 %v834_v34, %v53_v29  ;;  %837 = vrsqrt.f32 %v1022_v36  ;;  %v152_v26 = vand.u32 2147483648, %v1019_v33 }
  0x83   :  { %v132_v40 = vmul.f32 %v832_v31, %v131_v35  ;;  %839 = vrsqrt.f32 %v1024_v37  ;;  %vm173_vm9 = vcmp.eq.f32.partialorder %v1022_v36, inf  ;;  %vm175_vm10 = vcmp.eq.f32.partialorder %v1022_v36, 0.0 }
  0x84   :  { %v157_v41 = vmul.f32 0.5, %v156_v38  ;;  %v68_v42 = vmul.f32 %v834_v34, %v67_v39  ;;  %vm61_vm11 = vcmp.eq.f32.partialorder %v1024_v37, inf  ;;  %vm63_vm12 = vcmp.eq.f32.partialorder %v1024_v37, 0.0 }
  0x85   :  { %v133_v43 = vmul.f32 0.5, %v132_v40 }
  0x86   :  { %v158_v44 = vsub.f32 1.5, %v157_v41  ;;  %v69_v45 = vmul.f32 0.5, %v68_v42 }
  0x87   :  { %v836_v46 = vpop.eup %835  ;;  %v134_v48 = vsub.f32 1.5, %v133_v43 }
  0x88   :  { %v838_v49 = vpop.eup %837  ;;  %v159_v50 = vmul.f32 %v830_v30, %v158_v44  ;;  %v70_v51 = vsub.f32 1.5, %v69_v45  ;;  %v143_v52 = vmul.f32 %v836_v46, %v1019_v33 }
  0x89   :  { %v135_v53 = vmul.f32 %v832_v31, %v134_v48  ;;  %v167_v55 = vmul.f32 %v838_v49, %v1022_v36  ;;  %v840_v56 = vpop.eup %839  ;;  %v64_v31 = vand.u32 2147483648, %v1024_v37 }
  0x8a   :  { %v160_v57 = vmul.f32 %v159_v50, %v126_v27  ;;  %v71_v58 = vmul.f32 %v834_v34, %v70_v51  ;;  %v144_v59 = vmul.f32 %v836_v46, %v143_v52  ;;  %v55_v62 = vmul.f32 %v840_v56, %v1024_v37 }
  0x8b   :  { %v136_v60 = vmul.f32 %v135_v53, %v120_v28  ;;  %v168_v61 = vmul.f32 %v838_v49, %v167_v55 }
  0x8c   :  { %v162_v63 = vsel %vm161_vm1, %v126_v27, %v160_v57  ;;  %v72_v3 = vmul.f32 %v71_v58, %v53_v29  ;;  %v145_v5 = vmul.f32 0.5, %v144_v59  ;;  %v56_v11 = vmul.f32 %v840_v56, %v55_v62  ;;  %v44_v59 = vld [vmem:[%s1316_s5 + $0x38] sm:$0xff] }
  0x8d   :  { %v165_v6 = vsel %vm163_vm2, %v164_v47, %v162_v63  ;;  %v138_v9 = vsel %vm137_vm3, %v120_v28, %v136_v60  ;;  %v169_v10 = vmul.f32 0.5, %v168_v61  ;;  %v176_v28 = vand.u32 2147483648, %v1022_v36  ;;  %805 = vmatpush.xpose.msk.msra.mxu0 %vm47_vm0, %v44_v59 }
  0x8e   :  { %v1034_v13 = vmax.f32 %v165_v6, 1e-15  ;;  %v141_v14 = vsel %vm139_vm4, %v140_v54, %v138_v9  ;;  %v74_v15 = vsel %vm73_vm5, %v53_v29, %v72_v3  ;;  %v146_v16 = vsub.f32 1.5, %v145_v5  ;;  %v327_v54 = vpop.permute.xlu2 %326 }
  0x8f   :  { %v1038_v17 = vmax.f32 %v141_v14, 1e-15  ;;  %v77_v18 = vsel %vm75_vm6, %v76_v4, %v74_v15  ;;  %v170_v19 = vsub.f32 1.5, %v169_v10  ;;  %v57_v20 = vmul.f32 0.5, %v56_v11 }
  0x90   :  { %841 = vrcp.f32 %v1034_v13  ;;  %v147_v21 = vmul.f32 %v836_v46, %v146_v16  ;;  %v1044_v22 = vmax.f32 %v77_v18, 1e-15  ;;  %v225_v41 = vand.u32 2147483647, %v1034_v13 }
  0x91   :  { %843 = vrcp.f32 %v1038_v17  ;;  %v171_v23 = vmul.f32 %v838_v49, %v170_v19  ;;  %v58_v24 = vsub.f32 1.5, %v57_v20  ;;  %vm221_vm13 = vweird.f32 %v1034_v13  ;;  %v43_v20 = vld [vmem:[%s1316_s5 + $0x30] sm:$0xff] }
  0x92   :  { %v148_v25 = vmul.f32 %v147_v21, %v1019_v33  ;;  %845 = vrcp.f32 %v1044_v22  ;;  %v195_v46 = vand.u32 2147483647, %v1038_v17  ;;  %vm191_vm14 = vweird.f32 %v1038_v17  ;;  %806 = vmatpush.xpose.msk.msra.mxu0 %vm47_vm0, %v43_v20 }
  0x93   :  { %v172_v27 = vmul.f32 %v171_v23, %v1022_v36  ;;  %v59_v29 = vmul.f32 %v840_v56, %v58_v24  ;;  %847 = vtanh.f32 %v1034_v13  ;;  %vm1080_vm15 = vcmp.eq.f32.partialorder %v225_v41, 8.507059e+37 }
  0x94   :  { %v150_v30 = vsel %vm149_vm7, %v1019_v33, %v148_v25  ;;  %v227_v33 = vand.u32 2147483648, %v1034_v13  ;;  %vm1094_vm2 = vcmp.eq.f32.partialorder %v195_v46, 8.507059e+37  ;;  %v197_v58 = vand.u32 2147483648, %v1038_v17 }
  0x95   :  { %v153_v32 = vsel %vm151_vm8, %v152_v26, %v150_v30  ;;  %v174_v34 = vsel %vm173_vm9, %v1022_v36, %v172_v27  ;;  %v60_v35 = vmul.f32 %v59_v29, %v1024_v37  ;;  %v106_v25 = vand.u32 2147483647, %v1044_v22 }
  0x96   :  { %v842_v38 = vpop.eup %841  ;;  %v1060_v39 = vmax.f32 %v153_v32, 1e-15  ;;  %v177_v40 = vsel %vm175_vm10, %v176_v28, %v174_v34  ;;  %v228_v50 = vor.u32 1.1754944e-38, %v227_v33  ;;  %v198_v18 = vor.u32 1.1754944e-38, %v197_v58 }
  0x97   :  { %v1064_v42 = vpop.eup %843  ;;  %v62_v43 = vsel %vm61_vm11, %v1024_v37, %v60_v35  ;;  %v217_v44 = vmul.f32 %v842_v38, %v1034_v13  ;;  %v1071_v36 = vmax.f32 %v177_v40, 1e-15  ;;  %vm222_vm1 = vweird.f32 %v842_v38 }
  0x98   :  { %849 = vrcp.f32 %v1060_v39  ;;  %v65_v45 = vsel %vm63_vm12, %v64_v31, %v62_v43  ;;  %v1084_v51 = vpop.permute.xlu1 %321  ;;  %v187_v37 = vmul.f32 %v1064_v42, %v1038_v17  ;;  %v1089_v52 = vpop.eup %845  ;;  %v212_v55 = vand.u32 2147483648, %v1060_v39  ;;  %vm223_vm5 = vmor %vm221_vm13, %vm222_vm1 }
  0x99   :  { %v1076_v47 = vmax.f32 %v65_v45, 1e-15  ;;  %v218_v48 = vsub.f32 1.0, %v217_v44  ;;  %851 = vtanh.f32 %v1038_v17  ;;  %v848_v60 = vpop.eup %847  ;;  %vm206_vm3 = vweird.f32 %v1060_v39  ;;  %v253_v43 = vpop.permute.xlu2 %252 }
  0x9a   :  { %853 = vtanh.f32 %v1044_v22  ;;  %v188_v56 = vsub.f32 1.0, %v187_v37  ;;  %v210_v62 = vand.u32 2147483647, %v1060_v39  ;;  %vm192_vm4 = vweird.f32 %v1064_v42 }
  0x9b   :  { %855 = vrcp.f32 %v1076_v47  ;;  %v219_v53 = vmul.f32 %v842_v38, %v218_v48  ;;  %v91_v3 = vand.u32 2147483647, %v1076_v47  ;;  %v98_v5 = vmul.f32 %v1089_v52, %v1044_v22  ;;  %vm193_vm6 = vmor %vm191_vm14, %vm192_vm4 }
  0x9c   :  { %857 = vrcp.f32 %v1071_v36  ;;  %v189_v4 = vmul.f32 %v1064_v42, %v188_v56  ;;  %v93_v10 = vand.u32 2147483648, %v1076_v47  ;;  %v213_v14 = vor.u32 1.1754944e-38, %v212_v55 }
  0x9d   :  { %v220_v61 = vadd.f32 %v842_v38, %v219_v53  ;;  %859 = vtanh.f32 %v1060_v39  ;;  %v99_v19 = vsub.f32 1.0, %v98_v5  ;;  %v108_v26 = vand.u32 2147483648, %v1044_v22 }
  0x9e   :  { %v850_v63 = vpop.eup %849  ;;  %861 = vtanh.f32 %v1076_v47  ;;  %v190_v16 = vadd.f32 %v1064_v42, %v189_v4  ;;  %vm103_vm7 = vweird.f32 %v1089_v52  ;;  %vm102_vm9 = vweird.f32 %v1044_v22  ;;  %v40_v4 = vld [vmem:[%s1316_s5 + $0x18] sm:$0xff] }
  0x9f   :  { %v852_v6 = vpop.eup %851  ;;  %v224_v9 = vsel %vm223_vm5, %v842_v38, %v220_v61  ;;  %v202_v11 = vmul.f32 %v850_v63, %v1060_v39  ;;  %v100_v30 = vmul.f32 %v1089_v52, %v99_v19  ;;  %vm207_vm8 = vweird.f32 %v850_v63  ;;  %vm104_vm11 = vmor %vm102_vm9, %vm103_vm7 }
  0xa0   :  { %v854_v15 = vpop.eup %853  ;;  %v229_v13 = vsel %vm1080_vm15, %v228_v50, %v224_v9  ;;  %v194_v29 = vsel %vm193_vm6, %v1064_v42, %v190_v16  ;;  %v258_v33 = vpop.permute.xlu1 %257  ;;  %v42_v42 = vld [vmem:[%s1316_s5 + $0x28] sm:$0xff]  ;;  %vm107_vm12 = vcmp.eq.f32.partialorder %v106_v25, 8.507059e+37  ;;  %v109_v44 = vor.u32 1.1754944e-38, %v108_v26  ;;  %vm208_vm13 = vmor %vm206_vm3, %vm207_vm8 }
  0xa1   :  { %v856_v21 = vpop.eup %855  ;;  %v230_v23 = vmul.f32 %v848_v60, %v229_v13  ;;  %v203_v24 = vsub.f32 1.0, %v202_v11  ;;  %v199_v34 = vsel %vm1094_vm2, %v198_v18, %v194_v29  ;;  %v101_v41 = vadd.f32 %v1089_v52, %v100_v30  ;;  %807 = vmatpush.xpose.msk.msra.mxu0 %vm47_vm0, %v42_v42  ;;  %v317_v50 = vpop.permute.xlu0 %316  ;;  %v38_v30 = vld [vmem:[%s1316_s5 + $0x8] sm:$0xff] }
  0xa2   :  { %v1130_v27 = vpop.eup %857  ;;  %v83_v28 = vmul.f32 %v856_v21, %v1076_v47  ;;  %v200_v40 = vmul.f32 %v852_v6, %v199_v34  ;;  %vm88_vm10 = vweird.f32 %v856_v21  ;;  %vm211_vm14 = vcmp.eq.f32.partialorder %v210_v62, 8.507059e+37  ;;  %v286_v13 = vpop.permute.xlu2 %285 }
  0xa3   :  { %v860_v31 = vpop.eup %859  ;;  %v248_v17 = vmul.f32 %v230_v23, %v950_v0  ;;  %v204_v32 = vmul.f32 %v850_v63, %v203_v24  ;;  %v105_v48 = vsel %vm104_vm11, %v1089_v52, %v101_v41  ;;  %vm87_vm15 = vweird.f32 %v1076_v47 }
  0xa4   :  { %v862_v35 = vpop.eup %861  ;;  %v84_v38 = vsub.f32 1.0, %v83_v28  ;;  %v246_v22 = vmul.f32 %v200_v40, %v955_v1  ;;  %v110_v37 = vsel %vm107_vm12, %v109_v44, %v105_v48  ;;  %vm89_vm1 = vmor %vm87_vm15, %vm88_vm10  ;;  %v94_v39 = vor.u32 1.1754944e-38, %v93_v10 }
  0xa5   :  { %v205_v0 = vadd.f32 %v850_v63, %v204_v32  ;;  %v336_v45 = vmul.f32 %v327_v54, %v248_v17  ;;  %v41_v54 = vld [vmem:[%s1316_s5 + $0x20] sm:$0xff]  ;;  %v111_v1 = vmul.f32 %v854_v15, %v110_v37  ;;  %v232_v52 = vmul.f32 %v1130_v27, %v1071_v36 }
  0xa6   :  { %v85_v46 = vmul.f32 %v856_v21, %v84_v38  ;;  %v334_v56 = vmul.f32 %v317_v50, %v246_v22  ;;  %808 = vmatpush.xpose.msk.msra.mxu0 %vm47_vm0, %v41_v54  ;;  %vm92_vm2 = vcmp.eq.f32.partialorder %v91_v3, 8.507059e+37  ;;  %863 = vtanh.f32 %v1071_v36 }
  0xa7   :  { %v209_v49 = vsel %vm208_vm13, %v850_v63, %v205_v0  ;;  %v352_v58 = vsel %vm47_vm0, %v336_v45, 0.0  ;;  %v113_v63 = vmul.f32 %v111_v1, %v960_v2  ;;  %v233_v6 = vsub.f32 1.0, %v232_v52 }
  0xa8   :  { %v86_v53 = vadd.f32 %v856_v21, %v85_v46  ;;  %v214_v55 = vsel %vm211_vm14, %v213_v14, %v209_v49  ;;  %v338_v62 = vsel %vm47_vm0, %v334_v56, 0.0  ;;  %v353_v47 = vrot.slane %v352_v58, 4  ;;  %v291_v2 = vpop.permute.xlu1 %290  ;;  %v39_v14 = vld [vmem:[%s1316_s5 + $0x10] sm:$0xff] }
  0xa9   :  { %v215_v57 = vmul.f32 %v860_v31, %v214_v55  ;;  %v261_v10 = vmul.f32 %v258_v33, %v113_v63  ;;  %v339_v3 = vrot.slane %v338_v62, 4  ;;  %v234_v11 = vmul.f32 %v1130_v27, %v233_v6  ;;  %v332_v1 = vpop.permute.xlu0 %331 }
  0xaa   :  { %v90_v59 = vsel %vm89_vm1, %v856_v21, %v86_v53  ;;  %809 = vmatpush.xpose.msk.msra.mxu0 %vm47_vm0, %v40_v4  ;;  %vm236_vm3 = vweird.f32 %v1071_v36  ;;  %vm237_vm4 = vweird.f32 %v1130_v27  ;;  %v242_v19 = vand.u32 2147483648, %v1071_v36 }
  0xab   :  { %v95_v60 = vsel %vm92_vm2, %v94_v39, %v90_v59  ;;  %v247_v61 = vmul.f32 %v215_v57, %v971_v7  ;;  %v235_v21 = vadd.f32 %v1130_v27, %v234_v11  ;;  %v240_v23 = vand.u32 2147483647, %v1071_v36  ;;  %vm238_vm5 = vmor %vm236_vm3, %vm237_vm4  ;;  %v37_v36 = vld [vmem:[%s1316_s5] sm:$0xff] }
  0xac   :  { %v96_v5 = vmul.f32 %v862_v35, %v95_v60  ;;  %v294_v24 = vmul.f32 %v291_v2, %v113_v63  ;;  %v340_v28 = vadd.f32 %v339_v3, %v338_v62  ;;  %v864_v31 = vpop.eup %863  ;;  %v354_v17 = vadd.f32 %v353_v47, %v352_v58 }
  0xad   :  { %v335_v9 = vmul.f32 %v1084_v51, %v247_v61  ;;  %v269_v51 = vsel %vm47_vm0, %v261_v10, 0.0  ;;  %v239_v40 = vsel %vm238_vm5, %v1130_v27, %v235_v21  ;;  %v243_v41 = vor.u32 1.1754944e-38, %v242_v19 }
  0xae   :  { %v112_v7 = vmul.f32 %v96_v5, %v976_v8  ;;  %v270_v20 = vrot.slane %v269_v51, 4  ;;  %810 = vmatpush.xpose.msk.msra.mxu0 %vm47_vm0, %v39_v14  ;;  %v302_v33 = vsel %vm47_vm0, %v294_v24, 0.0  ;;  %vm241_vm6 = vcmp.eq.f32.partialorder %v240_v23, 8.507059e+37 }
  0xaf   :  { %v345_v15 = vsel %vm47_vm0, %v335_v9, 0.0  ;;  %v341_v44 = vrot.slane %v340_v28, 2  ;;  %v244_v45 = vsel %vm241_vm6, %v243_v41, %v239_v40  ;;  %v303_v46 = vrot.slane %v302_v33, 4 }
  0xb0   :  { %v260_v16 = vmul.f32 %v253_v43, %v112_v7  ;;  %v346_v18 = vrot.slane %v345_v15, 4  ;;  %v293_v8 = vmul.f32 %v286_v13, %v112_v7  ;;  %v271_v35 = vadd.f32 %v270_v20, %v269_v51 }
  0xb1   :  { %v245_v27 = vmul.f32 %v864_v31, %v244_v45  ;;  %v355_v50 = vrot.slane %v354_v17, 2  ;;  %v304_v53 = vadd.f32 %v303_v46, %v302_v33  ;;  %v342_v57 = vadd.f32 %v341_v44, %v340_v28 }
  0xb2   :  { %v262_v25 = vsel %vm47_vm0, %v260_v16, 0.0  ;;  %v347_v26 = vadd.f32 %v346_v18, %v345_v15  ;;  %v295_v29 = vsel %vm47_vm0, %v293_v8, 0.0  ;;  %v272_v0 = vrot.slane %v271_v35, 2  ;;  %811 = vmatpush.xpose.msk.msra.mxu0 %vm47_vm0, %v38_v30 }
  0xb3   :  { %v263_v32 = vrot.slane %v262_v25, 4  ;;  %v296_v34 = vrot.slane %v295_v29, 4  ;;  %v249_v39 = vmul.f32 %v245_v27, %v984_v12  ;;  %v305_v52 = vrot.slane %v304_v53, 2 }
  0xb4   :  { %v348_v38 = vrot.slane %v347_v26, 2  ;;  %v273_v49 = vadd.f32 %v272_v0, %v271_v35  ;;  %vm278_vm7 = vcmask 1041409   ;;  %vm281_vm8 = vcmask 254976  }
  0xb5   :  { %v264_v42 = vadd.f32 %v263_v32, %v262_v25  ;;  %v297_v43 = vadd.f32 %v296_v34, %v295_v29  ;;  %v337_v60 = vmul.f32 %v332_v1, %v249_v39  ;;  %v306_v62 = vadd.f32 %v305_v52, %v304_v53 }
  0xb6   :  { %v349_v37 = vadd.f32 %v348_v38, %v347_v26  ;;  %v274_v54 = vrot.slane %v273_v49, 1  ;;  %812 = vmatpush.xpose.msk.msra.mxu0 %vm47_vm0, %v37_v36  ;;  %v356_v63 = vadd.f32 %v355_v50, %v354_v17  ;;  %v343_v9 = vrot.slane %v342_v57, 1 }
  0xb7   :  { %v265_v22 = vrot.slane %v264_v42, 2  ;;  %v298_v48 = vrot.slane %v297_v43, 2  ;;  %v359_v6 = vsel %vm47_vm0, %v337_v60, 0.0  ;;  %v307_v47 = vrot.slane %v306_v62, 1 }
  0xb8   :  { %v350_v61 = vrot.slane %v349_v37, 1  ;;  %v275_v5 = vadd.f32 %v274_v54, %v273_v49  ;;  %v360_v12 = vrot.slane %v359_v6, 4  ;;  %v357_v14 = vrot.slane %v356_v63, 1 }
  0xb9   :  { %v266_v55 = vadd.f32 %v265_v22, %v264_v42  ;;  %v299_v56 = vadd.f32 %v298_v48, %v297_v43  ;;  %v308_v2 = vadd.f32 %v307_v47, %v306_v62  ;;  %v344_v15 = vadd.f32 %v343_v9, %v342_v57 }
  0xba   :  { %v351_v3 = vadd.f32 %v350_v61, %v349_v37  ;;  %v361_v11 = vadd.f32 %v360_v12, %v359_v6  ;;  %vm371_vm9 = vcmask 1042434   ;;  %v358_v8 = vadd.f32 %v357_v14, %v356_v63 }
  0xbb   :  { %v267_v58 = vrot.slane %v266_v55, 1  ;;  %v300_v59 = vrot.slane %v299_v56, 1  ;;  %vm373_vm10 = vcmask 1043459   ;;  %vm376_vm11 = vcmask 257024  }
  0xbc   :  { %v362_v13 = vrot.slane %v361_v11, 2  ;;  %v370_v16 = vsel %vm278_vm7, %v351_v3, %v344_v15  ;;  %vm444_vm12 = vcmask 523264  }
  0xbd   :  { %v268_v4 = vadd.f32 %v267_v58, %v266_v55  ;;  %v301_v10 = vadd.f32 %v300_v59, %v299_v56  ;;  %v372_v20 = vsel %vm371_vm9, %v358_v8, %v370_v16 }
  0xbe   :  { %v363_v18 = vadd.f32 %v362_v13, %v361_v11  ;;  %v651_v11 = vlaneseq }
  0xbf   :  { %v279_v7 = vsel %vm278_vm7, %v275_v5, %v268_v4  ;;  %v311_v51 = vsel %vm278_vm7, %v308_v2, %v301_v10 }
  0xc0   :  { %282 = vst.msk [vmem:[#allocation2] sm:$0x3] %vm281_vm8, %v279_v7  ;;  %v364_v19 = vrot.slane %v363_v18, 1 }
  0xc1   :  { %313 = vst.msk [vmem:[#allocation2 + $0x2] sm:$0x3] %vm281_vm8, %v311_v51  ;;  %v1226_v51 = vand.u32 127, %v651_v11 }
  0xc2   :  { %v365_v21 = vadd.f32 %v364_v19, %v363_v18 }
  0xc4   :  { %v374_v23 = vsel %vm373_vm10, %v365_v21, %v372_v20  ;;  %v655_v20 = vmul.u32 2, %v1226_v51 }
  0xc5   :  { %377 = vst.msk [vmem:[#allocation2 + $0x4] sm:$0xf] %vm376_vm11, %v374_v23 }
  0xcc   :  { %v378_v24 = vld [vmem:[#allocation2] sm:$0xff] }
  0xcd   :  { %813 = vmatmul.msk.f32.vlgmr.msra.gmra.mxu0 %vm47_vm0, %v378_v24  ;;  %v379_v25 = vmul.f32 %v378_v24, %v378_v24 }
  0xcf   :  { %v380_v26 = vsel %vm47_vm0, %v379_v25, 0.0 }
  0xd0   :  { %381 = vadd.xlane.f32.xlu2 %v380_v26  ;;  %v1230_v26 = vshrl.u32 %v651_v11, 7 }
  0xd2   :  { %vm656_vm9 = vcmp.ge.s32.totalorder %v1230_v26, %v655_v20 }
 0x143   :  { %v382_v31 = vpop.xlane.xlu2 %381 }
 0x144   :  { %865 = vrsqrt.f32 %v382_v31  ;;  %vm390_vm0 = vcmp.eq.f32.partialorder %v382_v31, inf  ;;  %v393_v42 = vand.u32 2147483648, %v382_v31  ;;  %vm392_vm13 = vcmp.eq.f32.partialorder %v382_v31, 0.0 }
 0x14a   :  { %v1210_v28 = vpop.f32.mrf.mxu0  ;;  %v866_v17 = vpop.eup %865 }
 0x14b   :  { %v443_v29 = vmul.f32 %v1210_v28, %v1210_v28  ;;  %v384_v32 = vmul.f32 %v866_v17, %v382_v31 }
 0x14d   :  { %v445_v30 = vsel %vm444_vm12, %v443_v29, 0.0  ;;  %v385_v34 = vmul.f32 %v866_v17, %v384_v32  ;;  %v657_v29 = vadd.s32 2, %v655_v20 }
 0x14e   :  { %446 = vadd.xlane.f32.xlu1 %v445_v30 }
 0x14f   :  { %v386_v35 = vmul.f32 0.5, %v385_v34  ;;  %vm658_vm10 = vcmp.lt.s32.totalorder %v1230_v26, %v657_v29 }
 0x150   :  { %vm659_vm11 = vmand %vm656_vm9, %vm658_vm10 }
 0x151   :  { %v387_v38 = vsub.f32 1.5, %v386_v35 }
 0x153   :  { %v388_v40 = vmul.f32 %v866_v17, %v387_v38  ;;  %v910_v17 = vmov 0.0  }
 0x154   :  { %v816_v32 = vsel %vm659_vm11, 1.0, %v910_v17 }
 0x155   :  { %v389_v41 = vmul.f32 %v388_v40, %v382_v31 }
 0x157   :  { %v391_v33 = vsel %vm390_vm0, %v382_v31, %v389_v41  ;;  %vm666_vm0 = vcmask 1041408  }
 0x158   :  { %v394_v43 = vsel %vm392_vm13, %v393_v42, %v391_v33  ;;  %vm662_vm13 = vcmask 15360  }
 0x159   :  { %v395_v0 = vmax.f32 %v394_v43, 1e-15 }
 0x15b   :  { %867 = vrcp.f32 %v395_v0  ;;  %v814_v45 = vclamps-f32 %v395_v0, 0.9999999  ;;  %v470_v61 = vand.u32 2147483647, %v395_v0  ;;  %v472_v62 = vand.u32 2147483648, %v395_v0 }
 0x15c   :  { %vm466_vm2 = vweird.f32 %v395_v0 }
 0x15d   :  { %v478_v49 = vadd.f32 1.0, %v814_v45  ;;  %v481_v27 = vsub.f32 1.0, %v814_v45  ;;  %v473_v9 = vor.u32 1.1754944e-38, %v472_v62  ;;  %vm471_vm4 = vcmp.eq.f32.partialorder %v470_v61, 8.507059e+37 }
 0x161   :  { %v868_v46 = vpop.eup %867 }
 0x162   :  { %v462_v22 = vmul.f32 %v868_v46, %v395_v0  ;;  %vm467_vm1 = vweird.f32 %v868_v46 }
 0x163   :  { %vm468_vm3 = vmor %vm466_vm2, %vm467_vm1 }
 0x164   :  { %v463_v37 = vsub.f32 1.0, %v462_v22 }
 0x166   :  { %v464_v54 = vmul.f32 %v868_v46, %v463_v37 }
 0x168   :  { %v465_v59 = vadd.f32 %v868_v46, %v464_v54 }
 0x16a   :  { %v469_v6 = vsel %vm468_vm3, %v868_v46, %v465_v59 }
 0x16b   :  { %v474_v12 = vsel %vm471_vm4, %v473_v9, %v469_v6 }
 0x1c1   :  { %v1215_v44 = vpop.xlane.xlu1 %446 }
 0x1c2   :  { %869 = vrsqrt.f32 %v1215_v44  ;;  %vm455_vm14 = vcmp.eq.f32.partialorder %v1215_v44, inf  ;;  %v458_v52 = vand.u32 2147483648, %v1215_v44  ;;  %vm457_vm15 = vcmp.eq.f32.partialorder %v1215_v44, 0.0 }
 0x1c3   :  { %871 = vlog2.f32 %v478_v49 }
 0x1c4   :  { %873 = vlog2.f32 %v481_v27 }
 0x1c8   :  { %v870_v36 = vpop.eup %869 }
 0x1c9   :  { %v449_v48 = vmul.f32 %v870_v36, %v1215_v44  ;;  %v872_v39 = vpop.eup %871 }
 0x1ca   :  { %v874_v1 = vpop.eup %873  ;;  %v480_v4 = vmul.f32 0.6931472, %v872_v39 }
 0x1cb   :  { %v450_v50 = vmul.f32 %v870_v36, %v449_v48  ;;  %v483_v5 = vmul.f32 0.6931472, %v874_v1 }
 0x1cd   :  { %v451_v53 = vmul.f32 0.5, %v450_v50  ;;  %v484_v10 = vsub.f32 %v480_v4, %v483_v5 }
 0x1cf   :  { %v452_v55 = vsub.f32 1.5, %v451_v53  ;;  %v485_v3 = vmul.f32 0.5, %v484_v10 }
 0x1d1   :  { %v453_v56 = vmul.f32 %v870_v36, %v452_v55 }
 0x1d3   :  { %v454_v57 = vmul.f32 %v453_v56, %v1215_v44 }
 0x1d5   :  { %v456_v58 = vsel %vm455_vm14, %v1215_v44, %v454_v57  ;;  %vm522_vm14 = vcmask 519168  }
 0x1d6   :  { %v459_v60 = vsel %vm457_vm15, %v458_v52, %v456_v58 }
 0x1d7   :  { %v460_v63 = vmax.f32 %v459_v60, 1e-15 }
 0x1d9   :  { %875 = vrcp.f32 %v460_v63  ;;  %v475_v47 = vmul.f32 %v474_v12, %v460_v63  ;;  %v499_v13 = vand.u32 2147483648, %v460_v63  ;;  %v497_v18 = vand.u32 2147483647, %v460_v63 }
 0x1da   :  { %vm493_vm6 = vweird.f32 %v460_v63 }
 0x1db   :  { %v486_v14 = vmul.f32 %v485_v3, %v475_v47  ;;  %v500_v19 = vor.u32 1.1754944e-38, %v499_v13  ;;  %vm498_vm8 = vcmp.eq.f32.partialorder %v497_v18, 8.507059e+37 }
 0x1dd   :  { %877 = vtanh.f32 %v486_v14 }
 0x1df   :  { %v876_v7 = vpop.eup %875 }
 0x1e0   :  { %v489_v2 = vmul.f32 %v876_v7, %v460_v63  ;;  %vm494_vm5 = vweird.f32 %v876_v7 }
 0x1e1   :  { %vm495_vm7 = vmor %vm493_vm6, %vm494_vm5 }
 0x1e2   :  { %v490_v15 = vsub.f32 1.0, %v489_v2 }
 0x1e3   :  { %v878_v25 = vpop.eup %877 }
 0x1e4   :  { %v491_v16 = vmul.f32 %v876_v7, %v490_v15 }
 0x1e6   :  { %v492_v8 = vadd.f32 %v876_v7, %v491_v16 }
 0x1e8   :  { %v496_v21 = vsel %vm495_vm7, %v876_v7, %v492_v8 }
 0x1e9   :  { %v501_v23 = vsel %vm498_vm8, %v500_v19, %v496_v21 }
 0x1ea   :  { %v502_v24 = vmul.f32 %v501_v23, %v1210_v28 }
 0x1ec   :  { %v503_v30 = vmul.f32 %v878_v25, %v502_v24 }
 0x1ee   :  { %v507_v31 = vsel %vm457_vm15, 0.0, %v503_v30 }
 0x1ef   :  { %508 = vst.msk [vmem:[#allocation3] sm:$0xff] %vm444_vm12, %v507_v31  ;;  %vm513_vm12 = vcmask 517120  }
 0x1f6   :  { %v1238_v28 = vld [vmem:[#allocation3] sm:$0x3]  ;;  %v511_v34 = vld [vmem:[#allocation3 + $0x4] sm:$0xf]  ;;  %v1244_v0 = vld [vmem:[#allocation3 + $0x2] sm:$0x3] }
 0x1f7   :  { %817 = vmatpush.msk.msra.mxu1 %vm666_vm0, %v1238_v28  ;;  %v521_v35 = vmul.f32 %v511_v34, %v511_v34  ;;  %v526_v44 = vmul.f32 %v1244_v0, %v1238_v28  ;;  %v512_v45 = vmul.f32 %v1238_v28, %v1238_v28  ;;  %v517_v7 = vmul.f32 %v1244_v0, %v1244_v0 }
 0x1f8   :  { %818 = vmatmul.msk.f32.vlgmr.msra.gmra.mxu1 %vm662_vm13, %v816_v32 }
 0x1f9   :  { %v523_v38 = vsel %vm522_vm14, %v521_v35, 0.0  ;;  %v527_v46 = vsel %vm513_vm12, %v526_v44, 0.0  ;;  %v514_v36 = vsel %vm513_vm12, %v512_v45, 0.0  ;;  %v518_v3 = vsel %vm513_vm12, %v517_v7, 0.0 }
 0x1fa   :  { %524 = vadd.xlane.f32.xlu2 %v523_v38 }
 0x26d   :  { %v525_v27 = vpop.xlane.xlu2 %524 }
 0x275   :  { %v687_v40 = vpop.f32.mrf.mxu1 }
 0x276   :  { %v690_v41 = vmul.f32 %v687_v40, %v687_v40  ;;  %v694_v33 = vmul.f32 %v687_v40, %v511_v34  ;;  %v701_v57 = vsub.f32 0.0, %v687_v40 }
 0x278   :  { %v695_v42 = vsel %vm522_vm14, %v694_v33, 0.0  ;;  %v691_v43 = vsel %vm522_vm14, %v690_v41, 0.0 }
 0x279   :  { %696 = vadd.xlane.f32.xlu0 %v695_v42  ;;  %692 = vadd.xlane.f32.xlu1 %v691_v43 }
 0x281   :  { %528 = vadd.xlane.f32.xlu0 %v527_v46  ;;  %515 = vadd.xlane.f32.xlu1 %v514_v36 }
 0x2ec   :  { %v697_v22 = vpop.xlane.xlu0 %696  ;;  %v693_v48 = vpop.xlane.xlu1 %692 }
 0x2ed   :  { %v698_v49 = vmul.f32 2.0, %v697_v22  ;;  %v706_v37 = vmul.f32 %v693_v48, %v525_v27  ;;  %v703_v1 = vsub.f32 1.0, %v693_v48 }
 0x2ef   :  { %v699_v50 = vsub.f32 1.0, %v698_v49  ;;  %v704_v62 = vmul.f32 %v703_v1, %v511_v34 }
 0x2f1   :  { %v707_v53 = vadd.f32 %v706_v37, %v699_v50  ;;  %v700_v54 = vadd.f32 %v699_v50, %v525_v27  ;;  %v599_v37 = vsub.f32 0.0, %v1238_v28 }
 0x2f3   :  { %v708_v55 = vmax.f32 %v707_v53, 1e-15  ;;  %v702_v59 = vmul.f32 %v701_v57, %v700_v54 }
 0x2f4   :  { %v1256_v2 = vpop.xlane.xlu0 %528  ;;  %v1259_v13 = vpop.xlane.xlu1 %515 }
 0x2f5   :  { %879 = vrcp.f32 %v708_v55  ;;  %v720_v58 = vand.u32 2147483648, %v708_v55  ;;  %v718_v61 = vand.u32 2147483647, %v708_v55  ;;  %vm714_vm1 = vweird.f32 %v708_v55 }
 0x2f6   :  { %v705_v5 = vadd.f32 %v704_v62, %v702_v59  ;;  %v531_v14 = vmul.f32 2.0, %v1256_v2  ;;  %v601_v1 = vsub.f32 1.0, %v1259_v13 }
 0x2f7   :  { %v721_v4 = vor.u32 1.1754944e-38, %v720_v58  ;;  %vm719_vm3 = vcmp.eq.f32.partialorder %v718_v61, 8.507059e+37 }
 0x2f8   :  { %v597_v19 = vsub.f32 1.0, %v531_v14 }
 0x2fb   :  { %v880_v56 = vpop.eup %879 }
 0x2fc   :  { %v710_v39 = vmul.f32 %v880_v56, %v708_v55  ;;  %vm715_vm15 = vweird.f32 %v880_v56 }
 0x2fd   :  { %vm716_vm2 = vmor %vm714_vm1, %vm715_vm15 }
 0x2fe   :  { %v711_v52 = vsub.f32 1.0, %v710_v39 }
 0x300   :  { %v712_v60 = vmul.f32 %v880_v56, %v711_v52 }
 0x302   :  { %v713_v63 = vadd.f32 %v880_v56, %v712_v60 }
 0x304   :  { %v717_v6 = vsel %vm716_vm2, %v880_v56, %v713_v63 }
 0x305   :  { %v722_v9 = vsel %vm719_vm3, %v721_v4, %v717_v6  ;;  %v602_v6 = vmul.f32 %v601_v1, %v1244_v0  ;;  %vm765_vm3 = vcmask 1043456  }
 0x306   :  { %v723_v10 = vmul.f32 %v722_v9, %v705_v5 }
 0x308   :  { %v724_v12 = vmul.f32 %v723_v10, %v723_v10 }
 0x30a   :  { %v725_v47 = vsel %vm522_vm14, %v724_v12, 0.0 }
 0x30b   :  { %726 = vadd.xlane.f32.xlu2 %v725_v47 }
 0x313   :  { %519 = vadd.xlane.f32.xlu2 %v518_v3 }
 0x37e   :  { %v727_v11 = vpop.xlane.xlu2 %726 }
 0x37f   :  { %881 = vrsqrt.f32 %v727_v11  ;;  %vm735_vm4 = vcmp.eq.f32.partialorder %v727_v11, inf  ;;  %v738_v43 = vand.u32 2147483648, %v727_v11  ;;  %vm737_vm5 = vcmp.eq.f32.partialorder %v727_v11, 0.0 }
 0x385   :  { %v882_v15 = vpop.eup %881 }
 0x386   :  { %v729_v16 = vmul.f32 %v882_v15, %v727_v11  ;;  %v1261_v18 = vpop.xlane.xlu2 %519 }
 0x387   :  { %v530_v8 = vadd.f32 %v1261_v18, %v1259_v13  ;;  %883 = vrsqrt.f32 %v1261_v18  ;;  %v559_v21 = vmul.f32 %v1261_v18, %v1259_v13  ;;  %v598_v36 = vadd.f32 %v597_v19, %v1261_v18 }
 0x388   :  { %v730_v20 = vmul.f32 %v882_v15, %v729_v16  ;;  %vm553_vm8 = vcmp.eq.f32.partialorder %v1261_v18, inf  ;;  %v556_v12 = vand.u32 2147483648, %v1261_v18  ;;  %vm555_vm13 = vcmp.eq.f32.partialorder %v1261_v18, 0.0 }
 0x389   :  { %v532_v23 = vsub.f32 %v530_v8, %v531_v14  ;;  %v560_v25 = vadd.f32 1.0, %v559_v21  ;;  %v604_v29 = vadd.f32 %v597_v19, %v559_v21  ;;  %v600_v52 = vmul.f32 %v599_v37, %v598_v36 }
 0x38a   :  { %v731_v24 = vmul.f32 0.5, %v730_v20 }
 0x38b   :  { %v1268_v30 = vmax.f32 %v532_v23, 0.0  ;;  %v561_v32 = vsub.f32 %v560_v25, %v531_v14  ;;  %v605_v34 = vmax.f32 %v604_v29, 1e-15  ;;  %v603_v3 = vadd.f32 %v602_v6, %v600_v52 }
 0x38c   :  { %v732_v31 = vsub.f32 1.5, %v731_v24 }
 0x38d   :  { %v884_v35 = vpop.eup %883  ;;  %885 = vrsqrt.f32 %v1268_v30  ;;  %v1272_v41 = vmax.f32 %v561_v32, 1e-15  ;;  %v615_v60 = vand.u32 2147483647, %v605_v34  ;;  %v617_v61 = vand.u32 2147483648, %v605_v34 }
 0x38e   :  { %v733_v38 = vmul.f32 %v882_v15, %v732_v31  ;;  %v547_v40 = vmul.f32 %v884_v35, %v1261_v18  ;;  %887 = vrcp.f32 %v605_v34  ;;  %vm611_vm7 = vweird.f32 %v605_v34 }
 0x38f   :  { %889 = vrsqrt.f32 %v1272_v41  ;;  %v618_v47 = vor.u32 1.1754944e-38, %v617_v61  ;;  %vm616_vm10 = vcmp.eq.f32.partialorder %v615_v60, 8.507059e+37  ;;  %vm541_vm11 = vcmp.eq.f32.partialorder %v1268_v30, inf }
 0x390   :  { %v734_v33 = vmul.f32 %v733_v38, %v727_v11  ;;  %v548_v42 = vmul.f32 %v884_v35, %v547_v40  ;;  %v544_v23 = vand.u32 2147483648, %v1268_v30  ;;  %vm543_vm0 = vcmp.eq.f32.partialorder %v1268_v30, 0.0 }
 0x391   :  { %vm570_vm14 = vcmp.eq.f32.partialorder %v1272_v41, inf  ;;  %vm572_vm15 = vcmp.eq.f32.partialorder %v1272_v41, 0.0 }
 0x392   :  { %v736_v44 = vsel %vm735_vm4, %v727_v11, %v734_v33  ;;  %v549_v45 = vmul.f32 0.5, %v548_v42  ;;  %v573_v33 = vand.u32 2147483648, %v1272_v41  ;;  %vm761_vm4 = vcmask 31744  }
 0x393   :  { %v886_v46 = vpop.eup %885  ;;  %v739_v22 = vsel %vm737_vm5, %v738_v43, %v736_v44  ;;  %v754_v43 = vmul.u32 2, %v1230_v26 }
 0x394   :  { %v888_v48 = vpop.eup %887  ;;  %v550_v49 = vsub.f32 1.5, %v549_v45  ;;  %v819_v27 = vclamps-f32 %v739_v22, 0.9999999  ;;  %v535_v50 = vmul.f32 %v886_v46, %v1268_v30 }
 0x395   :  { %v607_v53 = vmul.f32 %v888_v48, %v605_v34  ;;  %v890_v55 = vpop.eup %889  ;;  %vm612_vm6 = vweird.f32 %v888_v48  ;;  %v756_v22 = vadd.s32 2, %v754_v43  ;;  %vm755_vm1 = vcmp.ge.s32.totalorder %v1226_v51, %v754_v43 }
 0x396   :  { %v551_v56 = vmul.f32 %v884_v35, %v550_v49  ;;  %v742_v54 = vadd.f32 1.0, %v819_v27  ;;  %v745_v39 = vsub.f32 1.0, %v819_v27  ;;  %v536_v57 = vmul.f32 %v886_v46, %v535_v50  ;;  %vm613_vm9 = vmor %vm611_vm7, %vm612_vm6 }
 0x397   :  { %v608_v58 = vsub.f32 1.0, %v607_v53  ;;  %v564_v59 = vmul.f32 %v890_v55, %v1272_v41 }
 0x398   :  { %891 = vlog2.f32 %v742_v54  ;;  %v537_v62 = vmul.f32 0.5, %v536_v57  ;;  %v552_v4 = vmul.f32 %v551_v56, %v1261_v18  ;;  %v579_v56 = vadd.f32 1.0, %v1259_v13 }
 0x399   :  { %v609_v63 = vmul.f32 %v888_v48, %v608_v58  ;;  %893 = vlog2.f32 %v745_v39  ;;  %v565_v28 = vmul.f32 %v890_v55, %v564_v59 }
 0x39a   :  { %v538_v5 = vsub.f32 1.5, %v537_v62  ;;  %v554_v0 = vsel %vm553_vm8, %v1261_v18, %v552_v4  ;;  %v580_v1 = vmul.f32 %v579_v56, %v1261_v18 }
 0x39b   :  { %v610_v9 = vadd.f32 %v888_v48, %v609_v63  ;;  %v566_v10 = vmul.f32 0.5, %v565_v28  ;;  %v557_v34 = vsel %vm555_vm13, %v556_v12, %v554_v0 }
 0x39c   :  { %v539_v7 = vmul.f32 %v886_v46, %v538_v5 }
 0x39d   :  { %v614_v11 = vsel %vm613_vm9, %v888_v48, %v610_v9  ;;  %v567_v14 = vsub.f32 1.5, %v566_v10  ;;  %vm793_vm9 = vcmask 1024  }
 0x39e   :  { %v892_v15 = vpop.eup %891  ;;  %v619_v16 = vsel %vm616_vm10, %v618_v47, %v614_v11  ;;  %v540_v8 = vmul.f32 %v539_v7, %v1268_v30 }
 0x39f   :  { %v894_v19 = vpop.eup %893  ;;  %v620_v20 = vmul.f32 %v619_v16, %v603_v3  ;;  %v744_v21 = vmul.f32 0.6931472, %v892_v15  ;;  %v568_v24 = vmul.f32 %v890_v55, %v567_v14 }
 0x3a0   :  { %v747_v25 = vmul.f32 0.6931472, %v894_v19  ;;  %v542_v29 = vsel %vm541_vm11, %v1268_v30, %v540_v8 }
 0x3a1   :  { %v621_v31 = vmul.f32 %v620_v20, %v620_v20  ;;  %v545_v32 = vsel %vm543_vm0, %v544_v23, %v542_v29  ;;  %v569_v35 = vmul.f32 %v568_v24, %v1272_v41  ;;  %vm799_vm0 = vcmask 9224  }
 0x3a2   :  { %v748_v38 = vsub.f32 %v744_v21, %v747_v25  ;;  %v558_v40 = vmul.f32 %v557_v34, %v545_v32 }
 0x3a3   :  { %v622_v42 = vsel %vm513_vm12, %v621_v31, 0.0  ;;  %v571_v44 = vsel %vm570_vm14, %v1272_v41, %v569_v35  ;;  %vm757_vm12 = vcmp.lt.s32.totalorder %v1226_v51, %v756_v22  ;;  %v577_v41 = vadd.f32 1.0, %v1261_v18 }
 0x3a4   :  { %623 = vadd.xlane.f32.xlu0 %v622_v42  ;;  %v749_v30 = vmul.f32 0.5, %v748_v38  ;;  %v574_v45 = vsel %vm572_vm15, %v573_v33, %v571_v44  ;;  %vm758_vm2 = vmand %vm755_vm1, %vm757_vm12 }
 0x3a5   :  { %v575_v46 = vmul.f32 %v574_v45, %v558_v40  ;;  %v820_v37 = vsel %vm758_vm2, 1.0, %v910_v17  ;;  %v578_v39 = vmul.f32 %v577_v41, %v1256_v2 }
 0x3a6   :  { %v750_v36 = vmul.f32 2.0, %v749_v30 }
 0x3a7   :  { %v576_v48 = vmax.f32 %v575_v46, 1e-15  ;;  %v581_v17 = vsub.f32 %v578_v39, %v580_v1 }
 0x3a8   :  { %v751_v49 = vsub.f32 0.0, %v750_v36 }
 0x3a9   :  { %895 = vrcp.f32 %v576_v48  ;;  %v593_v54 = vand.u32 2147483648, %v576_v48  ;;  %v591_v57 = vand.u32 2147483647, %v576_v48  ;;  %vm587_vm6 = vweird.f32 %v576_v48 }
 0x3aa   :  { %v752_v27 = vmul.f32 1.442695, %v751_v49 }
 0x3ab   :  { %v594_v58 = vor.u32 1.1754944e-38, %v593_v54  ;;  %vm592_vm8 = vcmp.eq.f32.partialorder %v591_v57, 8.507059e+37 }
 0x3ac   :  { %897 = vpow2.f32 %v752_v27 }
 0x3af   :  { %v896_v26 = vpop.eup %895 }
 0x3b0   :  { %v583_v50 = vmul.f32 %v896_v26, %v576_v48  ;;  %vm588_vm5 = vweird.f32 %v896_v26 }
 0x3b1   :  { %vm589_vm7 = vmor %vm587_vm6, %vm588_vm5 }
 0x3b2   :  { %v898_v53 = vpop.eup %897  ;;  %v584_v55 = vsub.f32 1.0, %v583_v50 }
 0x3b3   :  { %821 = vmatpush.msk.msra.mxu2 %vm765_vm3, %v898_v53 }
 0x3b4   :  { %822 = vmatmul.msk.f32.vlgmr.msra.gmra.mxu2 %vm761_vm4, %v820_v37  ;;  %v585_v51 = vmul.f32 %v896_v26, %v584_v55 }
 0x3b6   :  { %v586_v52 = vadd.f32 %v896_v26, %v585_v51 }
 0x3b8   :  { %v590_v59 = vsel %vm589_vm7, %v896_v26, %v586_v52 }
 0x3b9   :  { %v595_v60 = vsel %vm592_vm8, %v594_v58, %v590_v59 }
 0x3ba   :  { %v596_v13 = vmul.f32 %v595_v60, %v581_v17 }
 0x3bc   :  { %794 = vst.msk [vmem:[%s1317_s6] sm:$0x3] %vm793_vm9, %v596_v13 }
 0x417   :  { %v624_v2 = vpop.xlane.xlu0 %623 }
 0x418   :  { %899 = vrsqrt.f32 %v624_v2  ;;  %vm632_vm10 = vcmp.eq.f32.partialorder %v624_v2, inf  ;;  %v635_v6 = vand.u32 2147483648, %v624_v2  ;;  %vm634_vm11 = vcmp.eq.f32.partialorder %v624_v2, 0.0 }
 0x41e   :  { %v900_v61 = vpop.eup %899 }
 0x41f   :  { %v626_v62 = vmul.f32 %v900_v61, %v624_v2 }
 0x421   :  { %v627_v63 = vmul.f32 %v900_v61, %v626_v62 }
 0x423   :  { %v628_v18 = vmul.f32 0.5, %v627_v63 }
 0x425   :  { %v629_v28 = vsub.f32 1.5, %v628_v18 }
 0x427   :  { %v630_v4 = vmul.f32 %v900_v61, %v629_v28 }
 0x429   :  { %v631_v5 = vmul.f32 %v630_v4, %v624_v2 }
 0x42b   :  { %v633_v9 = vsel %vm632_vm10, %v624_v2, %v631_v5 }
 0x42c   :  { %v636_v10 = vsel %vm634_vm11, %v635_v6, %v633_v9 }
 0x42d   :  { %v815_v12 = vclamps-f32 %v636_v10, 0.9999999 }
 0x42f   :  { %v639_v47 = vadd.f32 1.0, %v815_v12  ;;  %v642_v7 = vsub.f32 1.0, %v815_v12 }
 0x431   :  { %901 = vlog2.f32 %v639_v47 }
 0x432   :  { %903 = vlog2.f32 %v642_v7 }
 0x437   :  { %v902_v3 = vpop.eup %901  ;;  %v786_v21 = vpop.f32.mrf.mxu2 }
 0x438   :  { %v904_v11 = vpop.eup %903  ;;  %v641_v14 = vmul.f32 0.6931472, %v902_v3 }
 0x439   :  { %v644_v15 = vmul.f32 0.6931472, %v904_v11 }
 0x43b   :  { %v645_v16 = vsub.f32 %v641_v14, %v644_v15 }
 0x43d   :  { %v646_v8 = vmul.f32 0.5, %v645_v16 }
 0x43f   :  { %v647_v0 = vmul.f32 2.0, %v646_v8 }
 0x441   :  { %v648_v19 = vsub.f32 0.0, %v647_v0 }
 0x443   :  { %v649_v20 = vmul.f32 1.442695, %v648_v19 }
 0x445   :  { %905 = vpow2.f32 %v649_v20 }
 0x44b   :  { %v906_v23 = vpop.eup %905 }
 0x44c   :  { %v789_v24 = vadd.f32 %v906_v23, %v786_v21 }
 0x44e   :  { %907 = vlog2.f32 %v789_v24 }
 0x454   :  { %v908_v25 = vpop.eup %907 }
 0x455   :  { %v791_v29 = vmul.f32 0.6931472, %v908_v25 }
 0x457   :  { %v792_v31 = vadd.f32 %v791_v29, %v647_v0 }
 0x459   :  { %796 = vrot.lane.b32.xlu1 %v792_v31, %s911_s11 }
 0x4cb   :  { %v797_v32 = vpop.permute.xlu1 %796 }
 0x4cc   :  { %800 = vst.msk [vmem:[%s1317_s6] sm:$0x3] %vm799_vm0, %v797_v32 }

</bundles_post_ra>
